<compile_context>
chip_gen: v5e
topology: v5e:2x2
jax: 0.10.0
libtpu: 0.0.40
codegen_flags: <defaults>
</compile_context>

<pallas_src>
import functools

import jax
import jax.numpy as jnp
import numpy as np
from jax.experimental import pallas as pl
from jax.experimental.pallas import tpu as pltpu


# ----------------------------- fused Pallas kernel ------------------------- #

def decoder_full_kernel(x_ref, pos_ref,
                        wq_ref, bq_ref, wk_ref, bk_ref, wv_ref, bv_ref,
                        wu_ref, bu_ref,
                        ln1w_ref, ln1b_ref, w1_ref, b1_ref, w2_ref, b2_ref,
                        ln2w_ref, ln2b_ref,
                        wl_ref, bl_ref,
                        o_ref, *, num_layers, num_heads, dim_kq):
    # x_ref: (1, S, D) block for one batch element; pos_ref: (S, D)
    x = x_ref[0].astype(jnp.float32) + pos_ref[...]          # (S, D)
    S = x.shape[0]
    scale = dim_kq ** (-0.5)
    inv_heads = 1.0 / float(num_heads)

    # causal mask (allow col <= row), computed ONCE and reused by every layer/head
    row = jax.lax.broadcasted_iota(jnp.int32, (S, S), 0)
    col = jax.lax.broadcasted_iota(jnp.int32, (S, S), 1)
    causal = col <= row

    for l in range(num_layers):                               # static unroll over layers
        # ---- multi-head causal attention (mean over heads) ----
        acc = jnp.zeros_like(x)
        for h in range(num_heads):                            # static unroll over heads
            # fold the 1/sqrt(dkq) scale into q (S x dkq) instead of the (S,S) scores
            q = (jnp.dot(x, wq_ref[l, h], preferred_element_type=jnp.float32)
                 + bq_ref[l, h]) * scale
            k = jnp.dot(x, wk_ref[l, h], preferred_element_type=jnp.float32) + bk_ref[l, h]
            v = jnp.dot(x, wv_ref[l, h], preferred_element_type=jnp.float32) + bv_ref[l, h]
            s = jnp.dot(q, k.T, preferred_element_type=jnp.float32)
            # TODO(synk): dropout on attention weights omitted (eval-mode identity).
            s = jnp.where(causal, s, -jnp.inf)
            s = s - jnp.max(s, axis=-1, keepdims=True)
            p = jnp.exp(s)
            p = p * pl.reciprocal(jnp.sum(p, axis=-1, keepdims=True), approx=True)
            ctx = jnp.dot(p, v, preferred_element_type=jnp.float32)
            acc = acc + jnp.dot(ctx, wu_ref[l, h], preferred_element_type=jnp.float32)
        # per-head W_up biases are pre-summed into bu_ref[l]; mean over heads
        attn = (acc + bu_ref[l]) * inv_heads

        # residual + LayerNorm 1 (biased variance, eps=1e-5, PyTorch semantics)
        x1 = x + attn
        mu1 = jnp.mean(x1, axis=-1, keepdims=True)
        var1 = jnp.mean((x1 - mu1) ** 2, axis=-1, keepdims=True)
        xn1 = (x1 - mu1) * jax.lax.rsqrt(var1 + 1e-5) * ln1w_ref[l] + ln1b_ref[l]

        # FFN: Linear -> ReLU -> (dropout=identity) -> Linear
        h1 = jnp.maximum(
            jnp.dot(xn1, w1_ref[l], preferred_element_type=jnp.float32) + b1_ref[l], 0.0)
        xff = jnp.dot(h1, w2_ref[l], preferred_element_type=jnp.float32) + b2_ref[l]

        # residual + LayerNorm 2
        x2 = xn1 + xff
        mu2 = jnp.mean(x2, axis=-1, keepdims=True)
        var2 = jnp.mean((x2 - mu2) ** 2, axis=-1, keepdims=True)
        x = (x2 - mu2) * jax.lax.rsqrt(var2 + 1e-5) * ln2w_ref[l] + ln2b_ref[l]

    # logits head
    y = jnp.dot(x, wl_ref[...], preferred_element_type=jnp.float32) + bl_ref[...]
    o_ref[...] = y[None].astype(o_ref.dtype)


# ----------------------------- wrapper -------------------------------------- #

def _const_spec(shape):
    zeros = (0,) * len(shape)
    return pl.BlockSpec(shape, lambda b, _z=zeros: _z)


def pack_params(params, seq_len):
    """Stack per-layer weights along a leading layer axis; pre-sum W_up biases over heads."""
    blocks = params["blocks"]

    def stack(key):
        return jnp.stack([blk[key] for blk in blocks])

    return {
        "pos_emb": params["pos_emb"][:seq_len],
        "wq": stack("wq"), "bq": stack("bq"),                # (NB, H, D, dkq), (NB, H, 1, dkq)
        "wk": stack("wk"), "bk": stack("bk"),
        "wv": stack("wv"), "bv": stack("bv"),
        "wu": stack("wu"),                                   # (NB, H, dv, D)
        "bu": jnp.stack([blk["bu"].sum(axis=0) for blk in blocks]),   # (NB, 1, D)
        "ln1w": stack("ln1w"), "ln1b": stack("ln1b"),
        "w1": stack("w1"), "b1": stack("b1"),
        "w2": stack("w2"), "b2": stack("b2"),
        "ln2w": stack("ln2w"), "ln2b": stack("ln2b"),
        "w_logits": params["w_logits"], "b_logits": params["b_logits"],
    }


def decoder_full(x, params):
    B, S, D = x.shape
    p = pack_params(params, S)
    NB, H, _, dkq = p["wq"].shape
    L = p["w_logits"].shape[-1]

    kern = functools.partial(decoder_full_kernel,
                             num_layers=NB, num_heads=H, dim_kq=dkq)

    operands = (x, p["pos_emb"],
                p["wq"], p["bq"], p["wk"], p["bk"], p["wv"], p["bv"],
                p["wu"], p["bu"],
                p["ln1w"], p["ln1b"], p["w1"], p["b1"], p["w2"], p["b2"],
                p["ln2w"], p["ln2b"],
                p["w_logits"], p["b_logits"])

    in_specs = [pl.BlockSpec((1, S, D), lambda b: (b, 0, 0))] + \
               [_const_spec(op.shape) for op in operands[1:]]

    # NOTE: output last dim (L) is < 128, so stores are masked regardless; padding to 128
    # lanes is not worth it at these byte counts. Revisit if dim_logits is scaled up.
    return pl.pallas_call(
        kern,
        out_shape=jax.ShapeDtypeStruct((B, S, L), x.dtype),
        grid=(B,),
        in_specs=in_specs,
        out_specs=pl.BlockSpec((1, S, L), lambda b: (b, 0, 0)),
        compiler_params=pltpu.CompilerParams(dimension_semantics=("parallel",)),
    )(*operands)


# ----------------------------- parameter init ------------------------------- #

def _linear(key, din, dout):
    k1, k2 = jax.random.split(key)
    bound = 1.0 / np.sqrt(din)
    w = jax.random.uniform(k1, (din, dout), jnp.float32, -bound, bound)
    b = jax.random.uniform(k2, (1, dout), jnp.float32, -bound, bound)
    return w, b


def init_params(key, cfg):
    D, dkq, dv, F = cfg["dim_attn_in"], cfg["dim_KQ"], cfg["dim_V"], cfg["dim_ffn"]
    H, NB, L, S = (cfg["num_msAttnHeads"], cfg["num_decoder_blocks"],
                   cfg["dim_logits"], cfg["seq_len"])
    key, kp = jax.random.split(key)
    params = {"pos_emb": jax.random.normal(kp, (S, D), jnp.float32)}
    blocks = []
    for _ in range(NB):
        wq, bq, wk, bk, wv, bv, wu, bu = [], [], [], [], [], [], [], []
        for _ in range(H):
            key, k1, k2, k3, k4 = jax.random.split(key, 5)
            w, b = _linear(k1, D, dkq); wq.append(w); bq.append(b)
            w, b = _linear(k2, D, dkq); wk.append(w); bk.append(b)
            w, b = _linear(k3, D, dv);  wv.append(w); bv.append(b)
            w, b = _linear(k4, dv, D);  wu.append(w); bu.append(b)
        key, k1, k2 = jax.random.split(key, 3)
        w1, b1 = _linear(k1, D, F)
        w2, b2 = _linear(k2, F, D)
        blocks.append({
            "wq": jnp.stack(wq), "bq": jnp.stack(bq),
            "wk": jnp.stack(wk), "bk": jnp.stack(bk),
            "wv": jnp.stack(wv), "bv": jnp.stack(bv),
            "wu": jnp.stack(wu), "bu": jnp.stack(bu),
            "ln1w": jnp.ones((1, D), jnp.float32), "ln1b": jnp.zeros((1, D), jnp.float32),
            "w1": w1, "b1": b1, "w2": w2, "b2": b2,
            "ln2w": jnp.ones((1, D), jnp.float32), "ln2b": jnp.zeros((1, D), jnp.float32),
        })
    key, kl = jax.random.split(key)
    wl, bl = _linear(kl, D, L)
    params["blocks"] = blocks
    params["w_logits"] = wl
    params["b_logits"] = bl
    return params


# ----------------------------- pure-JAX reference --------------------------- #

def _ref_layernorm(x, w, b):
    mu = jnp.mean(x, axis=-1, keepdims=True)
    var = jnp.mean((x - mu) ** 2, axis=-1, keepdims=True)
    return (x - mu) * jax.lax.rsqrt(var + 1e-5) * w + b


def ref_block(x, p):
    H, _, dkq = p["wq"].shape
    S = x.shape[1]
    mask = jnp.triu(jnp.ones((S, S), bool), k=1)
    acc = jnp.zeros_like(x)
    for h in range(H):
        q = x @ p["wq"][h] + p["bq"][h, 0]
        k = x @ p["wk"][h] + p["bk"][h, 0]
        v = x @ p["wv"][h] + p["bv"][h, 0]
        a = q @ jnp.swapaxes(k, -1, -2) * dkq ** (-0.5)
        a = jnp.where(mask, -jnp.inf, a)
        A = jax.nn.softmax(a, axis=-1)
        acc = acc + (A @ v) @ p["wu"][h] + p["bu"][h, 0]
    x = _ref_layernorm(x + acc / H, p["ln1w"][0], p["ln1b"][0])
    xff = jax.nn.relu(x @ p["w1"] + p["b1"][0]) @ p["w2"] + p["b2"][0]
    return _ref_layernorm(x + xff, p["ln2w"][0], p["ln2b"][0])


def ref_forward(x, params):
    S = x.shape[1]
    x = x + params["pos_emb"][:S][None]
    for blk in params["blocks"]:
        x = ref_block(x, blk)
    return x @ params["w_logits"] + params["b_logits"][0]


# ----------------------------- main ------------------------------------------ #

if __name__ == "__main__":
    cfg = dict(seq_len=8, dim_attn_in=32, dim_KQ=16, dim_V=16, dim_ffn=64,
               num_msAttnHeads=2, num_decoder_blocks=2, dim_logits=16,
               dropout_rate=0.0)

    key = jax.random.PRNGKey(0)
    key, kx = jax.random.split(key)
    B, S, D = 2, cfg["seq_len"], cfg["dim_attn_in"]
    x = jax.random.normal(kx, (B, S, D), jnp.float32)

    params = init_params(key, cfg)

    out = decoder_full(x, params)
    out = jax.block_until_ready(out)

    ref = ref_forward(x, params)
    # tolerance relaxed from 1e-4 -> 1e-3 because the softmax denominator now uses the
    # approximate (EUP) reciprocal; semantics errors would still be orders of magnitude larger.
    np.testing.assert_allclose(np.asarray(out), np.asarray(ref), atol=1e-3, rtol=1e-3)

    print("KERNEL_OK")
</pallas_src>

<mosaic_0001>
module attributes {stable_mosaic.version = 11 : i64} {
  func.func @decoder_full_kernel(%arg0: i32, %arg1: memref<1x8x32xf32, #tpu.memory_space<vmem>>, %arg2: memref<8x32xf32, #tpu.memory_space<vmem>>, %arg3: memref<2x2x32x16xf32, #tpu.memory_space<vmem>>, %arg4: memref<2x2x1x16xf32, #tpu.memory_space<vmem>>, %arg5: memref<2x2x32x16xf32, #tpu.memory_space<vmem>>, %arg6: memref<2x2x1x16xf32, #tpu.memory_space<vmem>>, %arg7: memref<2x2x32x16xf32, #tpu.memory_space<vmem>>, %arg8: memref<2x2x1x16xf32, #tpu.memory_space<vmem>>, %arg9: memref<2x2x16x32xf32, #tpu.memory_space<vmem>>, %arg10: memref<2x1x32xf32, #tpu.memory_space<vmem>>, %arg11: memref<2x1x32xf32, #tpu.memory_space<vmem>>, %arg12: memref<2x1x32xf32, #tpu.memory_space<vmem>>, %arg13: memref<2x32x64xf32, #tpu.memory_space<vmem>>, %arg14: memref<2x1x64xf32, #tpu.memory_space<vmem>>, %arg15: memref<2x64x32xf32, #tpu.memory_space<vmem>>, %arg16: memref<2x1x32xf32, #tpu.memory_space<vmem>>, %arg17: memref<2x1x32xf32, #tpu.memory_space<vmem>>, %arg18: memref<2x1x32xf32, #tpu.memory_space<vmem>>, %arg19: memref<32x16xf32, #tpu.memory_space<vmem>>, %arg20: memref<1x16xf32, #tpu.memory_space<vmem>>, %arg21: memref<1x8x16xf32, #tpu.memory_space<vmem>>) attributes {dimension_semantics = [#tpu.dimension_semantics<parallel>], iteration_bounds = array<i64: 2>, scalar_prefetch = 0 : i64, scratch_operands = 0 : i64, tpu.core_type = #tpu.core_type<tc>, window_params = [{transform_indices = @transform_0, window_bounds = array<i64: 1, 8, 32>}, {pipeline_mode = #tpu.pipeline_mode<synchronous>, transform_indices = @transform_1, window_bounds = array<i64: 8, 32>}, {pipeline_mode = #tpu.pipeline_mode<synchronous>, transform_indices = @transform_2, window_bounds = array<i64: 2, 2, 32, 16>}, {pipeline_mode = #tpu.pipeline_mode<synchronous>, transform_indices = @transform_3, window_bounds = array<i64: 2, 2, 1, 16>}, {pipeline_mode = #tpu.pipeline_mode<synchronous>, transform_indices = @transform_4, window_bounds = array<i64: 2, 2, 32, 16>}, {pipeline_mode = #tpu.pipeline_mode<synchronous>, transform_indices = @transform_5, window_bounds = array<i64: 2, 2, 1, 16>}, {pipeline_mode = #tpu.pipeline_mode<synchronous>, transform_indices = @transform_6, window_bounds = array<i64: 2, 2, 32, 16>}, {pipeline_mode = #tpu.pipeline_mode<synchronous>, transform_indices = @transform_7, window_bounds = array<i64: 2, 2, 1, 16>}, {pipeline_mode = #tpu.pipeline_mode<synchronous>, transform_indices = @transform_8, window_bounds = array<i64: 2, 2, 16, 32>}, {pipeline_mode = #tpu.pipeline_mode<synchronous>, transform_indices = @transform_9, window_bounds = array<i64: 2, 1, 32>}, {pipeline_mode = #tpu.pipeline_mode<synchronous>, transform_indices = @transform_10, window_bounds = array<i64: 2, 1, 32>}, {pipeline_mode = #tpu.pipeline_mode<synchronous>, transform_indices = @transform_11, window_bounds = array<i64: 2, 1, 32>}, {pipeline_mode = #tpu.pipeline_mode<synchronous>, transform_indices = @transform_12, window_bounds = array<i64: 2, 32, 64>}, {pipeline_mode = #tpu.pipeline_mode<synchronous>, transform_indices = @transform_13, window_bounds = array<i64: 2, 1, 64>}, {pipeline_mode = #tpu.pipeline_mode<synchronous>, transform_indices = @transform_14, window_bounds = array<i64: 2, 64, 32>}, {pipeline_mode = #tpu.pipeline_mode<synchronous>, transform_indices = @transform_15, window_bounds = array<i64: 2, 1, 32>}, {pipeline_mode = #tpu.pipeline_mode<synchronous>, transform_indices = @transform_16, window_bounds = array<i64: 2, 1, 32>}, {pipeline_mode = #tpu.pipeline_mode<synchronous>, transform_indices = @transform_17, window_bounds = array<i64: 2, 1, 32>}, {pipeline_mode = #tpu.pipeline_mode<synchronous>, transform_indices = @transform_18, window_bounds = array<i64: 32, 16>}, {pipeline_mode = #tpu.pipeline_mode<synchronous>, transform_indices = @transform_19, window_bounds = array<i64: 1, 16>}, {transform_indices = @transform_20, window_bounds = array<i64: 1, 8, 16>}]} {
    %c0 = arith.constant 0 : index
    %c0_0 = arith.constant 0 : index
    %c0_1 = arith.constant 0 : index
    %0 = vector.load %arg1[%c0, %c0_0, %c0_1] : memref<1x8x32xf32, #tpu.memory_space<vmem>>, vector<1x8x32xf32>
    %1 = vector.shape_cast %0 : vector<1x8x32xf32> to vector<8x32xf32>
    %c0_2 = arith.constant 0 : index
    %c0_3 = arith.constant 0 : index
    %2 = vector.load %arg2[%c0_2, %c0_3] : memref<8x32xf32, #tpu.memory_space<vmem>>, vector<8x32xf32>
    %3 = arith.addf %1, %2 : vector<8x32xf32>
    %4 = tpu.iota {dimensions = array<i32: 0>} : vector<8x8xi32>
    %5 = tpu.iota {dimensions = array<i32: 1>} : vector<8x8xi32>
    %6 = arith.cmpi sle, %5, %4 : vector<8x8xi32>
    %cst = arith.constant 0.000000e+00 : f32
    %7 = vector.broadcast %cst : f32 to vector<8x32xf32>
    %c0_4 = arith.constant 0 : index
    %c0_5 = arith.constant 0 : index
    %c0_6 = arith.constant 0 : index
    %c0_7 = arith.constant 0 : index
    %8 = vector.load %arg3[%c0_4, %c0_5, %c0_6, %c0_7] : memref<2x2x32x16xf32, #tpu.memory_space<vmem>>, vector<1x1x32x16xf32>
    %9 = vector.shape_cast %8 : vector<1x1x32x16xf32> to vector<32x16xf32>
    %cst_8 = arith.constant dense<0.000000e+00> : vector<8x16xf32>
    %10 = tpu.matmul %3, %9, %cst_8 {dimension_numbers = #tpu.dot_dimension_numbers<[1], [0], [0], [1], [0, 0, 1, 1], [], []>} : vector<8x32xf32>, vector<32x16xf32>, vector<8x16xf32> -> vector<8x16xf32>
    %c0_9 = arith.constant 0 : index
    %c0_10 = arith.constant 0 : index
    %c0_11 = arith.constant 0 : index
    %c0_12 = arith.constant 0 : index
    %11 = vector.load %arg4[%c0_9, %c0_10, %c0_11, %c0_12] : memref<2x2x1x16xf32, #tpu.memory_space<vmem>>, vector<1x1x1x16xf32>
    %12 = vector.shape_cast %11 : vector<1x1x1x16xf32> to vector<1x16xf32>
    %13 = vector.broadcast %12 : vector<1x16xf32> to vector<8x16xf32>
    %14 = arith.addf %10, %13 : vector<8x16xf32>
    %cst_13 = arith.constant 2.500000e-01 : f32
    %15 = vector.broadcast %cst_13 : f32 to vector<8x16xf32>
    %16 = arith.mulf %14, %15 : vector<8x16xf32>
    %c0_14 = arith.constant 0 : index
    %c0_15 = arith.constant 0 : index
    %c0_16 = arith.constant 0 : index
    %c0_17 = arith.constant 0 : index
    %17 = vector.load %arg5[%c0_14, %c0_15, %c0_16, %c0_17] : memref<2x2x32x16xf32, #tpu.memory_space<vmem>>, vector<1x1x32x16xf32>
    %18 = vector.shape_cast %17 : vector<1x1x32x16xf32> to vector<32x16xf32>
    %cst_18 = arith.constant dense<0.000000e+00> : vector<8x16xf32>
    %19 = tpu.matmul %3, %18, %cst_18 {dimension_numbers = #tpu.dot_dimension_numbers<[1], [0], [0], [1], [0, 0, 1, 1], [], []>} : vector<8x32xf32>, vector<32x16xf32>, vector<8x16xf32> -> vector<8x16xf32>
    %c0_19 = arith.constant 0 : index
    %c0_20 = arith.constant 0 : index
    %c0_21 = arith.constant 0 : index
    %c0_22 = arith.constant 0 : index
    %20 = vector.load %arg6[%c0_19, %c0_20, %c0_21, %c0_22] : memref<2x2x1x16xf32, #tpu.memory_space<vmem>>, vector<1x1x1x16xf32>
    %21 = vector.shape_cast %20 : vector<1x1x1x16xf32> to vector<1x16xf32>
    %22 = vector.broadcast %21 : vector<1x16xf32> to vector<8x16xf32>
    %23 = arith.addf %19, %22 : vector<8x16xf32>
    %c0_23 = arith.constant 0 : index
    %c0_24 = arith.constant 0 : index
    %c0_25 = arith.constant 0 : index
    %c0_26 = arith.constant 0 : index
    %24 = vector.load %arg7[%c0_23, %c0_24, %c0_25, %c0_26] : memref<2x2x32x16xf32, #tpu.memory_space<vmem>>, vector<1x1x32x16xf32>
    %25 = vector.shape_cast %24 : vector<1x1x32x16xf32> to vector<32x16xf32>
    %cst_27 = arith.constant dense<0.000000e+00> : vector<8x16xf32>
    %26 = tpu.matmul %3, %25, %cst_27 {dimension_numbers = #tpu.dot_dimension_numbers<[1], [0], [0], [1], [0, 0, 1, 1], [], []>} : vector<8x32xf32>, vector<32x16xf32>, vector<8x16xf32> -> vector<8x16xf32>
    %c0_28 = arith.constant 0 : index
    %c0_29 = arith.constant 0 : index
    %c0_30 = arith.constant 0 : index
    %c0_31 = arith.constant 0 : index
    %27 = vector.load %arg8[%c0_28, %c0_29, %c0_30, %c0_31] : memref<2x2x1x16xf32, #tpu.memory_space<vmem>>, vector<1x1x1x16xf32>
    %28 = vector.shape_cast %27 : vector<1x1x1x16xf32> to vector<1x16xf32>
    %29 = vector.broadcast %28 : vector<1x16xf32> to vector<8x16xf32>
    %30 = arith.addf %26, %29 : vector<8x16xf32>
    %31 = tpu.transpose %23, [1, 0] : vector<8x16xf32> -> vector<16x8xf32>
    %cst_32 = arith.constant dense<0.000000e+00> : vector<8x8xf32>
    %32 = tpu.matmul %16, %31, %cst_32 {dimension_numbers = #tpu.dot_dimension_numbers<[1], [0], [0], [1], [0, 0, 1, 1], [], []>} : vector<8x16xf32>, vector<16x8xf32>, vector<8x8xf32> -> vector<8x8xf32>
    %cst_33 = arith.constant 0xFF800000 : f32
    %33 = vector.broadcast %cst_33 : f32 to vector<8x8xf32>
    %34 = arith.select %6, %32, %33 : vector<8x8xi1>, vector<8x8xf32>
    %cst_34 = arith.constant dense<0xFF800000> : vector<8xf32>
    %35 = vector.multi_reduction <maximumf>, %34, %cst_34 [1] : vector<8x8xf32> to vector<8xf32>
    %36 = vector.shape_cast %35 : vector<8xf32> to vector<8x1xf32>
    %37 = vector.broadcast %36 : vector<8x1xf32> to vector<8x8xf32>
    %38 = arith.subf %34, %37 : vector<8x8xf32>
    %39 = math.exp %38 : vector<8x8xf32>
    %cst_35 = arith.constant dense<0.000000e+00> : vector<8xf32>
    %40 = vector.multi_reduction <add>, %39, %cst_35 [1] : vector<8x8xf32> to vector<8xf32>
    %41 = vector.shape_cast %40 : vector<8xf32> to vector<8x1xf32>
    %42 = tpu.reciprocal %41 {approx = true} : vector<8x1xf32> -> vector<8x1xf32>
    %43 = vector.broadcast %42 : vector<8x1xf32> to vector<8x8xf32>
    %44 = arith.mulf %39, %43 : vector<8x8xf32>
    %cst_36 = arith.constant dense<0.000000e+00> : vector<8x16xf32>
    %45 = tpu.matmul %44, %30, %cst_36 {dimension_numbers = #tpu.dot_dimension_numbers<[1], [0], [0], [1], [0, 0, 1, 1], [], []>} : vector<8x8xf32>, vector<8x16xf32>, vector<8x16xf32> -> vector<8x16xf32>
    %c0_37 = arith.constant 0 : index
    %c0_38 = arith.constant 0 : index
    %c0_39 = arith.constant 0 : index
    %c0_40 = arith.constant 0 : index
    %46 = vector.load %arg9[%c0_37, %c0_38, %c0_39, %c0_40] : memref<2x2x16x32xf32, #tpu.memory_space<vmem>>, vector<1x1x16x32xf32>
    %47 = vector.shape_cast %46 : vector<1x1x16x32xf32> to vector<16x32xf32>
    %cst_41 = arith.constant dense<0.000000e+00> : vector<8x32xf32>
    %48 = tpu.matmul %45, %47, %cst_41 {dimension_numbers = #tpu.dot_dimension_numbers<[1], [0], [0], [1], [0, 0, 1, 1], [], []>} : vector<8x16xf32>, vector<16x32xf32>, vector<8x32xf32> -> vector<8x32xf32>
    %49 = arith.addf %7, %48 : vector<8x32xf32>
    %c0_42 = arith.constant 0 : index
    %c1 = arith.constant 1 : index
    %c0_43 = arith.constant 0 : index
    %c0_44 = arith.constant 0 : index
    %50 = vector.load %arg3[%c0_42, %c1, %c0_43, %c0_44] : memref<2x2x32x16xf32, #tpu.memory_space<vmem>>, vector<1x1x32x16xf32>
    %51 = vector.shape_cast %50 : vector<1x1x32x16xf32> to vector<32x16xf32>
    %cst_45 = arith.constant dense<0.000000e+00> : vector<8x16xf32>
    %52 = tpu.matmul %3, %51, %cst_45 {dimension_numbers = #tpu.dot_dimension_numbers<[1], [0], [0], [1], [0, 0, 1, 1], [], []>} : vector<8x32xf32>, vector<32x16xf32>, vector<8x16xf32> -> vector<8x16xf32>
    %c0_46 = arith.constant 0 : index
    %c1_47 = arith.constant 1 : index
    %c0_48 = arith.constant 0 : index
    %c0_49 = arith.constant 0 : index
    %53 = vector.load %arg4[%c0_46, %c1_47, %c0_48, %c0_49] : memref<2x2x1x16xf32, #tpu.memory_space<vmem>>, vector<1x1x1x16xf32>
    %54 = vector.shape_cast %53 : vector<1x1x1x16xf32> to vector<1x16xf32>
    %55 = vector.broadcast %54 : vector<1x16xf32> to vector<8x16xf32>
    %56 = arith.addf %52, %55 : vector<8x16xf32>
    %cst_50 = arith.constant 2.500000e-01 : f32
    %57 = vector.broadcast %cst_50 : f32 to vector<8x16xf32>
    %58 = arith.mulf %56, %57 : vector<8x16xf32>
    %c0_51 = arith.constant 0 : index
    %c1_52 = arith.constant 1 : index
    %c0_53 = arith.constant 0 : index
    %c0_54 = arith.constant 0 : index
    %59 = vector.load %arg5[%c0_51, %c1_52, %c0_53, %c0_54] : memref<2x2x32x16xf32, #tpu.memory_space<vmem>>, vector<1x1x32x16xf32>
    %60 = vector.shape_cast %59 : vector<1x1x32x16xf32> to vector<32x16xf32>
    %cst_55 = arith.constant dense<0.000000e+00> : vector<8x16xf32>
    %61 = tpu.matmul %3, %60, %cst_55 {dimension_numbers = #tpu.dot_dimension_numbers<[1], [0], [0], [1], [0, 0, 1, 1], [], []>} : vector<8x32xf32>, vector<32x16xf32>, vector<8x16xf32> -> vector<8x16xf32>
    %c0_56 = arith.constant 0 : index
    %c1_57 = arith.constant 1 : index
    %c0_58 = arith.constant 0 : index
    %c0_59 = arith.constant 0 : index
    %62 = vector.load %arg6[%c0_56, %c1_57, %c0_58, %c0_59] : memref<2x2x1x16xf32, #tpu.memory_space<vmem>>, vector<1x1x1x16xf32>
    %63 = vector.shape_cast %62 : vector<1x1x1x16xf32> to vector<1x16xf32>
    %64 = vector.broadcast %63 : vector<1x16xf32> to vector<8x16xf32>
    %65 = arith.addf %61, %64 : vector<8x16xf32>
    %c0_60 = arith.constant 0 : index
    %c1_61 = arith.constant 1 : index
    %c0_62 = arith.constant 0 : index
    %c0_63 = arith.constant 0 : index
    %66 = vector.load %arg7[%c0_60, %c1_61, %c0_62, %c0_63] : memref<2x2x32x16xf32, #tpu.memory_space<vmem>>, vector<1x1x32x16xf32>
    %67 = vector.shape_cast %66 : vector<1x1x32x16xf32> to vector<32x16xf32>
    %cst_64 = arith.constant dense<0.000000e+00> : vector<8x16xf32>
    %68 = tpu.matmul %3, %67, %cst_64 {dimension_numbers = #tpu.dot_dimension_numbers<[1], [0], [0], [1], [0, 0, 1, 1], [], []>} : vector<8x32xf32>, vector<32x16xf32>, vector<8x16xf32> -> vector<8x16xf32>
    %c0_65 = arith.constant 0 : index
    %c1_66 = arith.constant 1 : index
    %c0_67 = arith.constant 0 : index
    %c0_68 = arith.constant 0 : index
    %69 = vector.load %arg8[%c0_65, %c1_66, %c0_67, %c0_68] : memref<2x2x1x16xf32, #tpu.memory_space<vmem>>, vector<1x1x1x16xf32>
    %70 = vector.shape_cast %69 : vector<1x1x1x16xf32> to vector<1x16xf32>
    %71 = vector.broadcast %70 : vector<1x16xf32> to vector<8x16xf32>
    %72 = arith.addf %68, %71 : vector<8x16xf32>
    %73 = tpu.transpose %65, [1, 0] : vector<8x16xf32> -> vector<16x8xf32>
    %cst_69 = arith.constant dense<0.000000e+00> : vector<8x8xf32>
    %74 = tpu.matmul %58, %73, %cst_69 {dimension_numbers = #tpu.dot_dimension_numbers<[1], [0], [0], [1], [0, 0, 1, 1], [], []>} : vector<8x16xf32>, vector<16x8xf32>, vector<8x8xf32> -> vector<8x8xf32>
    %cst_70 = arith.constant 0xFF800000 : f32
    %75 = vector.broadcast %cst_70 : f32 to vector<8x8xf32>
    %76 = arith.select %6, %74, %75 : vector<8x8xi1>, vector<8x8xf32>
    %cst_71 = arith.constant dense<0xFF800000> : vector<8xf32>
    %77 = vector.multi_reduction <maximumf>, %76, %cst_71 [1] : vector<8x8xf32> to vector<8xf32>
    %78 = vector.shape_cast %77 : vector<8xf32> to vector<8x1xf32>
    %79 = vector.broadcast %78 : vector<8x1xf32> to vector<8x8xf32>
    %80 = arith.subf %76, %79 : vector<8x8xf32>
    %81 = math.exp %80 : vector<8x8xf32>
    %cst_72 = arith.constant dense<0.000000e+00> : vector<8xf32>
    %82 = vector.multi_reduction <add>, %81, %cst_72 [1] : vector<8x8xf32> to vector<8xf32>
    %83 = vector.shape_cast %82 : vector<8xf32> to vector<8x1xf32>
    %84 = tpu.reciprocal %83 {approx = true} : vector<8x1xf32> -> vector<8x1xf32>
    %85 = vector.broadcast %84 : vector<8x1xf32> to vector<8x8xf32>
    %86 = arith.mulf %81, %85 : vector<8x8xf32>
    %cst_73 = arith.constant dense<0.000000e+00> : vector<8x16xf32>
    %87 = tpu.matmul %86, %72, %cst_73 {dimension_numbers = #tpu.dot_dimension_numbers<[1], [0], [0], [1], [0, 0, 1, 1], [], []>} : vector<8x8xf32>, vector<8x16xf32>, vector<8x16xf32> -> vector<8x16xf32>
    %c0_74 = arith.constant 0 : index
    %c1_75 = arith.constant 1 : index
    %c0_76 = arith.constant 0 : index
    %c0_77 = arith.constant 0 : index
    %88 = vector.load %arg9[%c0_74, %c1_75, %c0_76, %c0_77] : memref<2x2x16x32xf32, #tpu.memory_space<vmem>>, vector<1x1x16x32xf32>
    %89 = vector.shape_cast %88 : vector<1x1x16x32xf32> to vector<16x32xf32>
    %cst_78 = arith.constant dense<0.000000e+00> : vector<8x32xf32>
    %90 = tpu.matmul %87, %89, %cst_78 {dimension_numbers = #tpu.dot_dimension_numbers<[1], [0], [0], [1], [0, 0, 1, 1], [], []>} : vector<8x16xf32>, vector<16x32xf32>, vector<8x32xf32> -> vector<8x32xf32>
    %91 = arith.addf %49, %90 : vector<8x32xf32>
    %c0_79 = arith.constant 0 : index
    %c0_80 = arith.constant 0 : index
    %c0_81 = arith.constant 0 : index
    %92 = vector.load %arg10[%c0_79, %c0_80, %c0_81] : memref<2x1x32xf32, #tpu.memory_space<vmem>>, vector<1x1x32xf32>
    %93 = vector.shape_cast %92 : vector<1x1x32xf32> to vector<1x32xf32>
    %94 = vector.broadcast %93 : vector<1x32xf32> to vector<8x32xf32>
    %95 = arith.addf %91, %94 : vector<8x32xf32>
    %cst_82 = arith.constant 5.000000e-01 : f32
    %96 = vector.broadcast %cst_82 : f32 to vector<8x32xf32>
    %97 = arith.mulf %95, %96 : vector<8x32xf32>
    %98 = arith.addf %3, %97 : vector<8x32xf32>
    %cst_83 = arith.constant dense<0.000000e+00> : vector<8xf32>
    %99 = vector.multi_reduction <add>, %98, %cst_83 [1] : vector<8x32xf32> to vector<8xf32>
    %100 = vector.shape_cast %99 : vector<8xf32> to vector<8x1xf32>
    %cst_84 = arith.constant 3.200000e+01 : f32
    %101 = vector.broadcast %cst_84 : f32 to vector<8x1xf32>
    %102 = arith.divf %100, %101 : vector<8x1xf32>
    %103 = vector.broadcast %102 : vector<8x1xf32> to vector<8x32xf32>
    %104 = arith.subf %98, %103 : vector<8x32xf32>
    %105 = arith.mulf %104, %104 : vector<8x32xf32>
    %cst_85 = arith.constant dense<0.000000e+00> : vector<8xf32>
    %106 = vector.multi_reduction <add>, %105, %cst_85 [1] : vector<8x32xf32> to vector<8xf32>
    %107 = vector.shape_cast %106 : vector<8xf32> to vector<8x1xf32>
    %cst_86 = arith.constant 3.200000e+01 : f32
    %108 = vector.broadcast %cst_86 : f32 to vector<8x1xf32>
    %109 = arith.divf %107, %108 : vector<8x1xf32>
    %110 = vector.broadcast %102 : vector<8x1xf32> to vector<8x32xf32>
    %111 = arith.subf %98, %110 : vector<8x32xf32>
    %cst_87 = arith.constant 9.99999974E-6 : f32
    %112 = vector.broadcast %cst_87 : f32 to vector<8x1xf32>
    %113 = arith.addf %109, %112 : vector<8x1xf32>
    %114 = math.rsqrt %113 : vector<8x1xf32>
    %115 = vector.broadcast %114 : vector<8x1xf32> to vector<8x32xf32>
    %116 = arith.mulf %111, %115 : vector<8x32xf32>
    %c0_88 = arith.constant 0 : index
    %c0_89 = arith.constant 0 : index
    %c0_90 = arith.constant 0 : index
    %117 = vector.load %arg11[%c0_88, %c0_89, %c0_90] : memref<2x1x32xf32, #tpu.memory_space<vmem>>, vector<1x1x32xf32>
    %118 = vector.shape_cast %117 : vector<1x1x32xf32> to vector<1x32xf32>
    %119 = vector.broadcast %118 : vector<1x32xf32> to vector<8x32xf32>
    %120 = arith.mulf %116, %119 : vector<8x32xf32>
    %c0_91 = arith.constant 0 : index
    %c0_92 = arith.constant 0 : index
    %c0_93 = arith.constant 0 : index
    %121 = vector.load %arg12[%c0_91, %c0_92, %c0_93] : memref<2x1x32xf32, #tpu.memory_space<vmem>>, vector<1x1x32xf32>
    %122 = vector.shape_cast %121 : vector<1x1x32xf32> to vector<1x32xf32>
    %123 = vector.broadcast %122 : vector<1x32xf32> to vector<8x32xf32>
    %124 = arith.addf %120, %123 : vector<8x32xf32>
    %c0_94 = arith.constant 0 : index
    %c0_95 = arith.constant 0 : index
    %c0_96 = arith.constant 0 : index
    %125 = vector.load %arg13[%c0_94, %c0_95, %c0_96] : memref<2x32x64xf32, #tpu.memory_space<vmem>>, vector<1x32x64xf32>
    %126 = vector.shape_cast %125 : vector<1x32x64xf32> to vector<32x64xf32>
    %cst_97 = arith.constant dense<0.000000e+00> : vector<8x64xf32>
    %127 = tpu.matmul %124, %126, %cst_97 {dimension_numbers = #tpu.dot_dimension_numbers<[1], [0], [0], [1], [0, 0, 1, 1], [], []>} : vector<8x32xf32>, vector<32x64xf32>, vector<8x64xf32> -> vector<8x64xf32>
    %c0_98 = arith.constant 0 : index
    %c0_99 = arith.constant 0 : index
    %c0_100 = arith.constant 0 : index
    %128 = vector.load %arg14[%c0_98, %c0_99, %c0_100] : memref<2x1x64xf32, #tpu.memory_space<vmem>>, vector<1x1x64xf32>
    %129 = vector.shape_cast %128 : vector<1x1x64xf32> to vector<1x64xf32>
    %130 = vector.broadcast %129 : vector<1x64xf32> to vector<8x64xf32>
    %131 = arith.addf %127, %130 : vector<8x64xf32>
    %cst_101 = arith.constant 0.000000e+00 : f32
    %132 = vector.broadcast %cst_101 : f32 to vector<8x64xf32>
    %133 = arith.maximumf %131, %132 : vector<8x64xf32>
    %c0_102 = arith.constant 0 : index
    %c0_103 = arith.constant 0 : index
    %c0_104 = arith.constant 0 : index
    %134 = vector.load %arg15[%c0_102, %c0_103, %c0_104] : memref<2x64x32xf32, #tpu.memory_space<vmem>>, vector<1x64x32xf32>
    %135 = vector.shape_cast %134 : vector<1x64x32xf32> to vector<64x32xf32>
    %cst_105 = arith.constant dense<0.000000e+00> : vector<8x32xf32>
    %136 = tpu.matmul %133, %135, %cst_105 {dimension_numbers = #tpu.dot_dimension_numbers<[1], [0], [0], [1], [0, 0, 1, 1], [], []>} : vector<8x64xf32>, vector<64x32xf32>, vector<8x32xf32> -> vector<8x32xf32>
    %c0_106 = arith.constant 0 : index
    %c0_107 = arith.constant 0 : index
    %c0_108 = arith.constant 0 : index
    %137 = vector.load %arg16[%c0_106, %c0_107, %c0_108] : memref<2x1x32xf32, #tpu.memory_space<vmem>>, vector<1x1x32xf32>
    %138 = vector.shape_cast %137 : vector<1x1x32xf32> to vector<1x32xf32>
    %139 = vector.broadcast %138 : vector<1x32xf32> to vector<8x32xf32>
    %140 = arith.addf %136, %139 : vector<8x32xf32>
    %141 = arith.addf %124, %140 : vector<8x32xf32>
    %cst_109 = arith.constant dense<0.000000e+00> : vector<8xf32>
    %142 = vector.multi_reduction <add>, %141, %cst_109 [1] : vector<8x32xf32> to vector<8xf32>
    %143 = vector.shape_cast %142 : vector<8xf32> to vector<8x1xf32>
    %cst_110 = arith.constant 3.200000e+01 : f32
    %144 = vector.broadcast %cst_110 : f32 to vector<8x1xf32>
    %145 = arith.divf %143, %144 : vector<8x1xf32>
    %146 = vector.broadcast %145 : vector<8x1xf32> to vector<8x32xf32>
    %147 = arith.subf %141, %146 : vector<8x32xf32>
    %148 = arith.mulf %147, %147 : vector<8x32xf32>
    %cst_111 = arith.constant dense<0.000000e+00> : vector<8xf32>
    %149 = vector.multi_reduction <add>, %148, %cst_111 [1] : vector<8x32xf32> to vector<8xf32>
    %150 = vector.shape_cast %149 : vector<8xf32> to vector<8x1xf32>
    %cst_112 = arith.constant 3.200000e+01 : f32
    %151 = vector.broadcast %cst_112 : f32 to vector<8x1xf32>
    %152 = arith.divf %150, %151 : vector<8x1xf32>
    %153 = vector.broadcast %145 : vector<8x1xf32> to vector<8x32xf32>
    %154 = arith.subf %141, %153 : vector<8x32xf32>
    %cst_113 = arith.constant 9.99999974E-6 : f32
    %155 = vector.broadcast %cst_113 : f32 to vector<8x1xf32>
    %156 = arith.addf %152, %155 : vector<8x1xf32>
    %157 = math.rsqrt %156 : vector<8x1xf32>
    %158 = vector.broadcast %157 : vector<8x1xf32> to vector<8x32xf32>
    %159 = arith.mulf %154, %158 : vector<8x32xf32>
    %c0_114 = arith.constant 0 : index
    %c0_115 = arith.constant 0 : index
    %c0_116 = arith.constant 0 : index
    %160 = vector.load %arg17[%c0_114, %c0_115, %c0_116] : memref<2x1x32xf32, #tpu.memory_space<vmem>>, vector<1x1x32xf32>
    %161 = vector.shape_cast %160 : vector<1x1x32xf32> to vector<1x32xf32>
    %162 = vector.broadcast %161 : vector<1x32xf32> to vector<8x32xf32>
    %163 = arith.mulf %159, %162 : vector<8x32xf32>
    %c0_117 = arith.constant 0 : index
    %c0_118 = arith.constant 0 : index
    %c0_119 = arith.constant 0 : index
    %164 = vector.load %arg18[%c0_117, %c0_118, %c0_119] : memref<2x1x32xf32, #tpu.memory_space<vmem>>, vector<1x1x32xf32>
    %165 = vector.shape_cast %164 : vector<1x1x32xf32> to vector<1x32xf32>
    %166 = vector.broadcast %165 : vector<1x32xf32> to vector<8x32xf32>
    %167 = arith.addf %163, %166 : vector<8x32xf32>
    %cst_120 = arith.constant 0.000000e+00 : f32
    %168 = vector.broadcast %cst_120 : f32 to vector<8x32xf32>
    %c1_121 = arith.constant 1 : index
    %c0_122 = arith.constant 0 : index
    %c0_123 = arith.constant 0 : index
    %c0_124 = arith.constant 0 : index
    %169 = vector.load %arg3[%c1_121, %c0_122, %c0_123, %c0_124] : memref<2x2x32x16xf32, #tpu.memory_space<vmem>>, vector<1x1x32x16xf32>
    %170 = vector.shape_cast %169 : vector<1x1x32x16xf32> to vector<32x16xf32>
    %cst_125 = arith.constant dense<0.000000e+00> : vector<8x16xf32>
    %171 = tpu.matmul %167, %170, %cst_125 {dimension_numbers = #tpu.dot_dimension_numbers<[1], [0], [0], [1], [0, 0, 1, 1], [], []>} : vector<8x32xf32>, vector<32x16xf32>, vector<8x16xf32> -> vector<8x16xf32>
    %c1_126 = arith.constant 1 : index
    %c0_127 = arith.constant 0 : index
    %c0_128 = arith.constant 0 : index
    %c0_129 = arith.constant 0 : index
    %172 = vector.load %arg4[%c1_126, %c0_127, %c0_128, %c0_129] : memref<2x2x1x16xf32, #tpu.memory_space<vmem>>, vector<1x1x1x16xf32>
    %173 = vector.shape_cast %172 : vector<1x1x1x16xf32> to vector<1x16xf32>
    %174 = vector.broadcast %173 : vector<1x16xf32> to vector<8x16xf32>
    %175 = arith.addf %171, %174 : vector<8x16xf32>
    %cst_130 = arith.constant 2.500000e-01 : f32
    %176 = vector.broadcast %cst_130 : f32 to vector<8x16xf32>
    %177 = arith.mulf %175, %176 : vector<8x16xf32>
    %c1_131 = arith.constant 1 : index
    %c0_132 = arith.constant 0 : index
    %c0_133 = arith.constant 0 : index
    %c0_134 = arith.constant 0 : index
    %178 = vector.load %arg5[%c1_131, %c0_132, %c0_133, %c0_134] : memref<2x2x32x16xf32, #tpu.memory_space<vmem>>, vector<1x1x32x16xf32>
    %179 = vector.shape_cast %178 : vector<1x1x32x16xf32> to vector<32x16xf32>
    %cst_135 = arith.constant dense<0.000000e+00> : vector<8x16xf32>
    %180 = tpu.matmul %167, %179, %cst_135 {dimension_numbers = #tpu.dot_dimension_numbers<[1], [0], [0], [1], [0, 0, 1, 1], [], []>} : vector<8x32xf32>, vector<32x16xf32>, vector<8x16xf32> -> vector<8x16xf32>
    %c1_136 = arith.constant 1 : index
    %c0_137 = arith.constant 0 : index
    %c0_138 = arith.constant 0 : index
    %c0_139 = arith.constant 0 : index
    %181 = vector.load %arg6[%c1_136, %c0_137, %c0_138, %c0_139] : memref<2x2x1x16xf32, #tpu.memory_space<vmem>>, vector<1x1x1x16xf32>
    %182 = vector.shape_cast %181 : vector<1x1x1x16xf32> to vector<1x16xf32>
    %183 = vector.broadcast %182 : vector<1x16xf32> to vector<8x16xf32>
    %184 = arith.addf %180, %183 : vector<8x16xf32>
    %c1_140 = arith.constant 1 : index
    %c0_141 = arith.constant 0 : index
    %c0_142 = arith.constant 0 : index
    %c0_143 = arith.constant 0 : index
    %185 = vector.load %arg7[%c1_140, %c0_141, %c0_142, %c0_143] : memref<2x2x32x16xf32, #tpu.memory_space<vmem>>, vector<1x1x32x16xf32>
    %186 = vector.shape_cast %185 : vector<1x1x32x16xf32> to vector<32x16xf32>
    %cst_144 = arith.constant dense<0.000000e+00> : vector<8x16xf32>
    %187 = tpu.matmul %167, %186, %cst_144 {dimension_numbers = #tpu.dot_dimension_numbers<[1], [0], [0], [1], [0, 0, 1, 1], [], []>} : vector<8x32xf32>, vector<32x16xf32>, vector<8x16xf32> -> vector<8x16xf32>
    %c1_145 = arith.constant 1 : index
    %c0_146 = arith.constant 0 : index
    %c0_147 = arith.constant 0 : index
    %c0_148 = arith.constant 0 : index
    %188 = vector.load %arg8[%c1_145, %c0_146, %c0_147, %c0_148] : memref<2x2x1x16xf32, #tpu.memory_space<vmem>>, vector<1x1x1x16xf32>
    %189 = vector.shape_cast %188 : vector<1x1x1x16xf32> to vector<1x16xf32>
    %190 = vector.broadcast %189 : vector<1x16xf32> to vector<8x16xf32>
    %191 = arith.addf %187, %190 : vector<8x16xf32>
    %192 = tpu.transpose %184, [1, 0] : vector<8x16xf32> -> vector<16x8xf32>
    %cst_149 = arith.constant dense<0.000000e+00> : vector<8x8xf32>
    %193 = tpu.matmul %177, %192, %cst_149 {dimension_numbers = #tpu.dot_dimension_numbers<[1], [0], [0], [1], [0, 0, 1, 1], [], []>} : vector<8x16xf32>, vector<16x8xf32>, vector<8x8xf32> -> vector<8x8xf32>
    %cst_150 = arith.constant 0xFF800000 : f32
    %194 = vector.broadcast %cst_150 : f32 to vector<8x8xf32>
    %195 = arith.select %6, %193, %194 : vector<8x8xi1>, vector<8x8xf32>
    %cst_151 = arith.constant dense<0xFF800000> : vector<8xf32>
    %196 = vector.multi_reduction <maximumf>, %195, %cst_151 [1] : vector<8x8xf32> to vector<8xf32>
    %197 = vector.shape_cast %196 : vector<8xf32> to vector<8x1xf32>
    %198 = vector.broadcast %197 : vector<8x1xf32> to vector<8x8xf32>
    %199 = arith.subf %195, %198 : vector<8x8xf32>
    %200 = math.exp %199 : vector<8x8xf32>
    %cst_152 = arith.constant dense<0.000000e+00> : vector<8xf32>
    %201 = vector.multi_reduction <add>, %200, %cst_152 [1] : vector<8x8xf32> to vector<8xf32>
    %202 = vector.shape_cast %201 : vector<8xf32> to vector<8x1xf32>
    %203 = tpu.reciprocal %202 {approx = true} : vector<8x1xf32> -> vector<8x1xf32>
    %204 = vector.broadcast %203 : vector<8x1xf32> to vector<8x8xf32>
    %205 = arith.mulf %200, %204 : vector<8x8xf32>
    %cst_153 = arith.constant dense<0.000000e+00> : vector<8x16xf32>
    %206 = tpu.matmul %205, %191, %cst_153 {dimension_numbers = #tpu.dot_dimension_numbers<[1], [0], [0], [1], [0, 0, 1, 1], [], []>} : vector<8x8xf32>, vector<8x16xf32>, vector<8x16xf32> -> vector<8x16xf32>
    %c1_154 = arith.constant 1 : index
    %c0_155 = arith.constant 0 : index
    %c0_156 = arith.constant 0 : index
    %c0_157 = arith.constant 0 : index
    %207 = vector.load %arg9[%c1_154, %c0_155, %c0_156, %c0_157] : memref<2x2x16x32xf32, #tpu.memory_space<vmem>>, vector<1x1x16x32xf32>
    %208 = vector.shape_cast %207 : vector<1x1x16x32xf32> to vector<16x32xf32>
    %cst_158 = arith.constant dense<0.000000e+00> : vector<8x32xf32>
    %209 = tpu.matmul %206, %208, %cst_158 {dimension_numbers = #tpu.dot_dimension_numbers<[1], [0], [0], [1], [0, 0, 1, 1], [], []>} : vector<8x16xf32>, vector<16x32xf32>, vector<8x32xf32> -> vector<8x32xf32>
    %210 = arith.addf %168, %209 : vector<8x32xf32>
    %c1_159 = arith.constant 1 : index
    %c1_160 = arith.constant 1 : index
    %c0_161 = arith.constant 0 : index
    %c0_162 = arith.constant 0 : index
    %211 = vector.load %arg3[%c1_159, %c1_160, %c0_161, %c0_162] : memref<2x2x32x16xf32, #tpu.memory_space<vmem>>, vector<1x1x32x16xf32>
    %212 = vector.shape_cast %211 : vector<1x1x32x16xf32> to vector<32x16xf32>
    %cst_163 = arith.constant dense<0.000000e+00> : vector<8x16xf32>
    %213 = tpu.matmul %167, %212, %cst_163 {dimension_numbers = #tpu.dot_dimension_numbers<[1], [0], [0], [1], [0, 0, 1, 1], [], []>} : vector<8x32xf32>, vector<32x16xf32>, vector<8x16xf32> -> vector<8x16xf32>
    %c1_164 = arith.constant 1 : index
    %c1_165 = arith.constant 1 : index
    %c0_166 = arith.constant 0 : index
    %c0_167 = arith.constant 0 : index
    %214 = vector.load %arg4[%c1_164, %c1_165, %c0_166, %c0_167] : memref<2x2x1x16xf32, #tpu.memory_space<vmem>>, vector<1x1x1x16xf32>
    %215 = vector.shape_cast %214 : vector<1x1x1x16xf32> to vector<1x16xf32>
    %216 = vector.broadcast %215 : vector<1x16xf32> to vector<8x16xf32>
    %217 = arith.addf %213, %216 : vector<8x16xf32>
    %cst_168 = arith.constant 2.500000e-01 : f32
    %218 = vector.broadcast %cst_168 : f32 to vector<8x16xf32>
    %219 = arith.mulf %217, %218 : vector<8x16xf32>
    %c1_169 = arith.constant 1 : index
    %c1_170 = arith.constant 1 : index
    %c0_171 = arith.constant 0 : index
    %c0_172 = arith.constant 0 : index
    %220 = vector.load %arg5[%c1_169, %c1_170, %c0_171, %c0_172] : memref<2x2x32x16xf32, #tpu.memory_space<vmem>>, vector<1x1x32x16xf32>
    %221 = vector.shape_cast %220 : vector<1x1x32x16xf32> to vector<32x16xf32>
    %cst_173 = arith.constant dense<0.000000e+00> : vector<8x16xf32>
    %222 = tpu.matmul %167, %221, %cst_173 {dimension_numbers = #tpu.dot_dimension_numbers<[1], [0], [0], [1], [0, 0, 1, 1], [], []>} : vector<8x32xf32>, vector<32x16xf32>, vector<8x16xf32> -> vector<8x16xf32>
    %c1_174 = arith.constant 1 : index
    %c1_175 = arith.constant 1 : index
    %c0_176 = arith.constant 0 : index
    %c0_177 = arith.constant 0 : index
    %223 = vector.load %arg6[%c1_174, %c1_175, %c0_176, %c0_177] : memref<2x2x1x16xf32, #tpu.memory_space<vmem>>, vector<1x1x1x16xf32>
    %224 = vector.shape_cast %223 : vector<1x1x1x16xf32> to vector<1x16xf32>
    %225 = vector.broadcast %224 : vector<1x16xf32> to vector<8x16xf32>
    %226 = arith.addf %222, %225 : vector<8x16xf32>
    %c1_178 = arith.constant 1 : index
    %c1_179 = arith.constant 1 : index
    %c0_180 = arith.constant 0 : index
    %c0_181 = arith.constant 0 : index
    %227 = vector.load %arg7[%c1_178, %c1_179, %c0_180, %c0_181] : memref<2x2x32x16xf32, #tpu.memory_space<vmem>>, vector<1x1x32x16xf32>
    %228 = vector.shape_cast %227 : vector<1x1x32x16xf32> to vector<32x16xf32>
    %cst_182 = arith.constant dense<0.000000e+00> : vector<8x16xf32>
    %229 = tpu.matmul %167, %228, %cst_182 {dimension_numbers = #tpu.dot_dimension_numbers<[1], [0], [0], [1], [0, 0, 1, 1], [], []>} : vector<8x32xf32>, vector<32x16xf32>, vector<8x16xf32> -> vector<8x16xf32>
    %c1_183 = arith.constant 1 : index
    %c1_184 = arith.constant 1 : index
    %c0_185 = arith.constant 0 : index
    %c0_186 = arith.constant 0 : index
    %230 = vector.load %arg8[%c1_183, %c1_184, %c0_185, %c0_186] : memref<2x2x1x16xf32, #tpu.memory_space<vmem>>, vector<1x1x1x16xf32>
    %231 = vector.shape_cast %230 : vector<1x1x1x16xf32> to vector<1x16xf32>
    %232 = vector.broadcast %231 : vector<1x16xf32> to vector<8x16xf32>
    %233 = arith.addf %229, %232 : vector<8x16xf32>
    %234 = tpu.transpose %226, [1, 0] : vector<8x16xf32> -> vector<16x8xf32>
    %cst_187 = arith.constant dense<0.000000e+00> : vector<8x8xf32>
    %235 = tpu.matmul %219, %234, %cst_187 {dimension_numbers = #tpu.dot_dimension_numbers<[1], [0], [0], [1], [0, 0, 1, 1], [], []>} : vector<8x16xf32>, vector<16x8xf32>, vector<8x8xf32> -> vector<8x8xf32>
    %cst_188 = arith.constant 0xFF800000 : f32
    %236 = vector.broadcast %cst_188 : f32 to vector<8x8xf32>
    %237 = arith.select %6, %235, %236 : vector<8x8xi1>, vector<8x8xf32>
    %cst_189 = arith.constant dense<0xFF800000> : vector<8xf32>
    %238 = vector.multi_reduction <maximumf>, %237, %cst_189 [1] : vector<8x8xf32> to vector<8xf32>
    %239 = vector.shape_cast %238 : vector<8xf32> to vector<8x1xf32>
    %240 = vector.broadcast %239 : vector<8x1xf32> to vector<8x8xf32>
    %241 = arith.subf %237, %240 : vector<8x8xf32>
    %242 = math.exp %241 : vector<8x8xf32>
    %cst_190 = arith.constant dense<0.000000e+00> : vector<8xf32>
    %243 = vector.multi_reduction <add>, %242, %cst_190 [1] : vector<8x8xf32> to vector<8xf32>
    %244 = vector.shape_cast %243 : vector<8xf32> to vector<8x1xf32>
    %245 = tpu.reciprocal %244 {approx = true} : vector<8x1xf32> -> vector<8x1xf32>
    %246 = vector.broadcast %245 : vector<8x1xf32> to vector<8x8xf32>
    %247 = arith.mulf %242, %246 : vector<8x8xf32>
    %cst_191 = arith.constant dense<0.000000e+00> : vector<8x16xf32>
    %248 = tpu.matmul %247, %233, %cst_191 {dimension_numbers = #tpu.dot_dimension_numbers<[1], [0], [0], [1], [0, 0, 1, 1], [], []>} : vector<8x8xf32>, vector<8x16xf32>, vector<8x16xf32> -> vector<8x16xf32>
    %c1_192 = arith.constant 1 : index
    %c1_193 = arith.constant 1 : index
    %c0_194 = arith.constant 0 : index
    %c0_195 = arith.constant 0 : index
    %249 = vector.load %arg9[%c1_192, %c1_193, %c0_194, %c0_195] : memref<2x2x16x32xf32, #tpu.memory_space<vmem>>, vector<1x1x16x32xf32>
    %250 = vector.shape_cast %249 : vector<1x1x16x32xf32> to vector<16x32xf32>
    %cst_196 = arith.constant dense<0.000000e+00> : vector<8x32xf32>
    %251 = tpu.matmul %248, %250, %cst_196 {dimension_numbers = #tpu.dot_dimension_numbers<[1], [0], [0], [1], [0, 0, 1, 1], [], []>} : vector<8x16xf32>, vector<16x32xf32>, vector<8x32xf32> -> vector<8x32xf32>
    %252 = arith.addf %210, %251 : vector<8x32xf32>
    %c1_197 = arith.constant 1 : index
    %c0_198 = arith.constant 0 : index
    %c0_199 = arith.constant 0 : index
    %253 = vector.load %arg10[%c1_197, %c0_198, %c0_199] : memref<2x1x32xf32, #tpu.memory_space<vmem>>, vector<1x1x32xf32>
    %254 = vector.shape_cast %253 : vector<1x1x32xf32> to vector<1x32xf32>
    %255 = vector.broadcast %254 : vector<1x32xf32> to vector<8x32xf32>
    %256 = arith.addf %252, %255 : vector<8x32xf32>
    %cst_200 = arith.constant 5.000000e-01 : f32
    %257 = vector.broadcast %cst_200 : f32 to vector<8x32xf32>
    %258 = arith.mulf %256, %257 : vector<8x32xf32>
    %259 = arith.addf %167, %258 : vector<8x32xf32>
    %cst_201 = arith.constant dense<0.000000e+00> : vector<8xf32>
    %260 = vector.multi_reduction <add>, %259, %cst_201 [1] : vector<8x32xf32> to vector<8xf32>
    %261 = vector.shape_cast %260 : vector<8xf32> to vector<8x1xf32>
    %cst_202 = arith.constant 3.200000e+01 : f32
    %262 = vector.broadcast %cst_202 : f32 to vector<8x1xf32>
    %263 = arith.divf %261, %262 : vector<8x1xf32>
    %264 = vector.broadcast %263 : vector<8x1xf32> to vector<8x32xf32>
    %265 = arith.subf %259, %264 : vector<8x32xf32>
    %266 = arith.mulf %265, %265 : vector<8x32xf32>
    %cst_203 = arith.constant dense<0.000000e+00> : vector<8xf32>
    %267 = vector.multi_reduction <add>, %266, %cst_203 [1] : vector<8x32xf32> to vector<8xf32>
    %268 = vector.shape_cast %267 : vector<8xf32> to vector<8x1xf32>
    %cst_204 = arith.constant 3.200000e+01 : f32
    %269 = vector.broadcast %cst_204 : f32 to vector<8x1xf32>
    %270 = arith.divf %268, %269 : vector<8x1xf32>
    %271 = vector.broadcast %263 : vector<8x1xf32> to vector<8x32xf32>
    %272 = arith.subf %259, %271 : vector<8x32xf32>
    %cst_205 = arith.constant 9.99999974E-6 : f32
    %273 = vector.broadcast %cst_205 : f32 to vector<8x1xf32>
    %274 = arith.addf %270, %273 : vector<8x1xf32>
    %275 = math.rsqrt %274 : vector<8x1xf32>
    %276 = vector.broadcast %275 : vector<8x1xf32> to vector<8x32xf32>
    %277 = arith.mulf %272, %276 : vector<8x32xf32>
    %c1_206 = arith.constant 1 : index
    %c0_207 = arith.constant 0 : index
    %c0_208 = arith.constant 0 : index
    %278 = vector.load %arg11[%c1_206, %c0_207, %c0_208] : memref<2x1x32xf32, #tpu.memory_space<vmem>>, vector<1x1x32xf32>
    %279 = vector.shape_cast %278 : vector<1x1x32xf32> to vector<1x32xf32>
    %280 = vector.broadcast %279 : vector<1x32xf32> to vector<8x32xf32>
    %281 = arith.mulf %277, %280 : vector<8x32xf32>
    %c1_209 = arith.constant 1 : index
    %c0_210 = arith.constant 0 : index
    %c0_211 = arith.constant 0 : index
    %282 = vector.load %arg12[%c1_209, %c0_210, %c0_211] : memref<2x1x32xf32, #tpu.memory_space<vmem>>, vector<1x1x32xf32>
    %283 = vector.shape_cast %282 : vector<1x1x32xf32> to vector<1x32xf32>
    %284 = vector.broadcast %283 : vector<1x32xf32> to vector<8x32xf32>
    %285 = arith.addf %281, %284 : vector<8x32xf32>
    %c1_212 = arith.constant 1 : index
    %c0_213 = arith.constant 0 : index
    %c0_214 = arith.constant 0 : index
    %286 = vector.load %arg13[%c1_212, %c0_213, %c0_214] : memref<2x32x64xf32, #tpu.memory_space<vmem>>, vector<1x32x64xf32>
    %287 = vector.shape_cast %286 : vector<1x32x64xf32> to vector<32x64xf32>
    %cst_215 = arith.constant dense<0.000000e+00> : vector<8x64xf32>
    %288 = tpu.matmul %285, %287, %cst_215 {dimension_numbers = #tpu.dot_dimension_numbers<[1], [0], [0], [1], [0, 0, 1, 1], [], []>} : vector<8x32xf32>, vector<32x64xf32>, vector<8x64xf32> -> vector<8x64xf32>
    %c1_216 = arith.constant 1 : index
    %c0_217 = arith.constant 0 : index
    %c0_218 = arith.constant 0 : index
    %289 = vector.load %arg14[%c1_216, %c0_217, %c0_218] : memref<2x1x64xf32, #tpu.memory_space<vmem>>, vector<1x1x64xf32>
    %290 = vector.shape_cast %289 : vector<1x1x64xf32> to vector<1x64xf32>
    %291 = vector.broadcast %290 : vector<1x64xf32> to vector<8x64xf32>
    %292 = arith.addf %288, %291 : vector<8x64xf32>
    %cst_219 = arith.constant 0.000000e+00 : f32
    %293 = vector.broadcast %cst_219 : f32 to vector<8x64xf32>
    %294 = arith.maximumf %292, %293 : vector<8x64xf32>
    %c1_220 = arith.constant 1 : index
    %c0_221 = arith.constant 0 : index
    %c0_222 = arith.constant 0 : index
    %295 = vector.load %arg15[%c1_220, %c0_221, %c0_222] : memref<2x64x32xf32, #tpu.memory_space<vmem>>, vector<1x64x32xf32>
    %296 = vector.shape_cast %295 : vector<1x64x32xf32> to vector<64x32xf32>
    %cst_223 = arith.constant dense<0.000000e+00> : vector<8x32xf32>
    %297 = tpu.matmul %294, %296, %cst_223 {dimension_numbers = #tpu.dot_dimension_numbers<[1], [0], [0], [1], [0, 0, 1, 1], [], []>} : vector<8x64xf32>, vector<64x32xf32>, vector<8x32xf32> -> vector<8x32xf32>
    %c1_224 = arith.constant 1 : index
    %c0_225 = arith.constant 0 : index
    %c0_226 = arith.constant 0 : index
    %298 = vector.load %arg16[%c1_224, %c0_225, %c0_226] : memref<2x1x32xf32, #tpu.memory_space<vmem>>, vector<1x1x32xf32>
    %299 = vector.shape_cast %298 : vector<1x1x32xf32> to vector<1x32xf32>
    %300 = vector.broadcast %299 : vector<1x32xf32> to vector<8x32xf32>
    %301 = arith.addf %297, %300 : vector<8x32xf32>
    %302 = arith.addf %285, %301 : vector<8x32xf32>
    %cst_227 = arith.constant dense<0.000000e+00> : vector<8xf32>
    %303 = vector.multi_reduction <add>, %302, %cst_227 [1] : vector<8x32xf32> to vector<8xf32>
    %304 = vector.shape_cast %303 : vector<8xf32> to vector<8x1xf32>
    %cst_228 = arith.constant 3.200000e+01 : f32
    %305 = vector.broadcast %cst_228 : f32 to vector<8x1xf32>
    %306 = arith.divf %304, %305 : vector<8x1xf32>
    %307 = vector.broadcast %306 : vector<8x1xf32> to vector<8x32xf32>
    %308 = arith.subf %302, %307 : vector<8x32xf32>
    %309 = arith.mulf %308, %308 : vector<8x32xf32>
    %cst_229 = arith.constant dense<0.000000e+00> : vector<8xf32>
    %310 = vector.multi_reduction <add>, %309, %cst_229 [1] : vector<8x32xf32> to vector<8xf32>
    %311 = vector.shape_cast %310 : vector<8xf32> to vector<8x1xf32>
    %cst_230 = arith.constant 3.200000e+01 : f32
    %312 = vector.broadcast %cst_230 : f32 to vector<8x1xf32>
    %313 = arith.divf %311, %312 : vector<8x1xf32>
    %314 = vector.broadcast %306 : vector<8x1xf32> to vector<8x32xf32>
    %315 = arith.subf %302, %314 : vector<8x32xf32>
    %cst_231 = arith.constant 9.99999974E-6 : f32
    %316 = vector.broadcast %cst_231 : f32 to vector<8x1xf32>
    %317 = arith.addf %313, %316 : vector<8x1xf32>
    %318 = math.rsqrt %317 : vector<8x1xf32>
    %319 = vector.broadcast %318 : vector<8x1xf32> to vector<8x32xf32>
    %320 = arith.mulf %315, %319 : vector<8x32xf32>
    %c1_232 = arith.constant 1 : index
    %c0_233 = arith.constant 0 : index
    %c0_234 = arith.constant 0 : index
    %321 = vector.load %arg17[%c1_232, %c0_233, %c0_234] : memref<2x1x32xf32, #tpu.memory_space<vmem>>, vector<1x1x32xf32>
    %322 = vector.shape_cast %321 : vector<1x1x32xf32> to vector<1x32xf32>
    %323 = vector.broadcast %322 : vector<1x32xf32> to vector<8x32xf32>
    %324 = arith.mulf %320, %323 : vector<8x32xf32>
    %c1_235 = arith.constant 1 : index
    %c0_236 = arith.constant 0 : index
    %c0_237 = arith.constant 0 : index
    %325 = vector.load %arg18[%c1_235, %c0_236, %c0_237] : memref<2x1x32xf32, #tpu.memory_space<vmem>>, vector<1x1x32xf32>
    %326 = vector.shape_cast %325 : vector<1x1x32xf32> to vector<1x32xf32>
    %327 = vector.broadcast %326 : vector<1x32xf32> to vector<8x32xf32>
    %328 = arith.addf %324, %327 : vector<8x32xf32>
    %c0_238 = arith.constant 0 : index
    %c0_239 = arith.constant 0 : index
    %329 = vector.load %arg19[%c0_238, %c0_239] : memref<32x16xf32, #tpu.memory_space<vmem>>, vector<32x16xf32>
    %cst_240 = arith.constant dense<0.000000e+00> : vector<8x16xf32>
    %330 = tpu.matmul %328, %329, %cst_240 {dimension_numbers = #tpu.dot_dimension_numbers<[1], [0], [0], [1], [0, 0, 1, 1], [], []>} : vector<8x32xf32>, vector<32x16xf32>, vector<8x16xf32> -> vector<8x16xf32>
    %c0_241 = arith.constant 0 : index
    %c0_242 = arith.constant 0 : index
    %331 = vector.load %arg20[%c0_241, %c0_242] : memref<1x16xf32, #tpu.memory_space<vmem>>, vector<1x16xf32>
    %332 = vector.broadcast %331 : vector<1x16xf32> to vector<8x16xf32>
    %333 = arith.addf %330, %332 : vector<8x16xf32>
    %334 = vector.shape_cast %333 : vector<8x16xf32> to vector<1x8x16xf32>
    %c0_243 = arith.constant 0 : index
    %c0_244 = arith.constant 0 : index
    %c0_245 = arith.constant 0 : index
    %335 = vector.load %arg21[%c0_243, %c0_244, %c0_245] : memref<1x8x16xf32, #tpu.memory_space<vmem>>, vector<1x8x16xf32>
    tpu.vector_store %arg21[%c0_243, %c0_244, %c0_245], %334 {strides = array<i32>} : memref<1x8x16xf32, #tpu.memory_space<vmem>>, vector<1x8x16xf32>,
    return
  }
  func.func @transform_0(%arg0: i32) -> (i32, i32, i32) {
    %c0_i32 = arith.constant 0 : i32
    %c0_i32_0 = arith.constant 0 : i32
    %c0_i32_1 = arith.constant 0 : i32
    return %arg0, %c0_i32, %c0_i32_0 : i32, i32, i32
  }
  func.func @transform_1(%arg0: i32) -> (i32, i32) {
    %c0_i32 = arith.constant 0 : i32
    %c0_i32_0 = arith.constant 0 : i32
    %c0_i32_1 = arith.constant 0 : i32
    return %c0_i32, %c0_i32_0 : i32, i32
  }
  func.func @transform_2(%arg0: i32) -> (i32, i32, i32, i32) {
    %c0_i32 = arith.constant 0 : i32
    %c0_i32_0 = arith.constant 0 : i32
    %c0_i32_1 = arith.constant 0 : i32
    %c0_i32_2 = arith.constant 0 : i32
    %c0_i32_3 = arith.constant 0 : i32
    return %c0_i32, %c0_i32_0, %c0_i32_1, %c0_i32_2 : i32, i32, i32, i32
  }
  func.func @transform_3(%arg0: i32) -> (i32, i32, i32, i32) {
    %c0_i32 = arith.constant 0 : i32
    %c0_i32_0 = arith.constant 0 : i32
    %c0_i32_1 = arith.constant 0 : i32
    %c0_i32_2 = arith.constant 0 : i32
    %c0_i32_3 = arith.constant 0 : i32
    return %c0_i32, %c0_i32_0, %c0_i32_1, %c0_i32_2 : i32, i32, i32, i32
  }
  func.func @transform_4(%arg0: i32) -> (i32, i32, i32, i32) {
    %c0_i32 = arith.constant 0 : i32
    %c0_i32_0 = arith.constant 0 : i32
    %c0_i32_1 = arith.constant 0 : i32
    %c0_i32_2 = arith.constant 0 : i32
    %c0_i32_3 = arith.constant 0 : i32
    return %c0_i32, %c0_i32_0, %c0_i32_1, %c0_i32_2 : i32, i32, i32, i32
  }
  func.func @transform_5(%arg0: i32) -> (i32, i32, i32, i32) {
    %c0_i32 = arith.constant 0 : i32
    %c0_i32_0 = arith.constant 0 : i32
    %c0_i32_1 = arith.constant 0 : i32
    %c0_i32_2 = arith.constant 0 : i32
    %c0_i32_3 = arith.constant 0 : i32
    return %c0_i32, %c0_i32_0, %c0_i32_1, %c0_i32_2 : i32, i32, i32, i32
  }
  func.func @transform_6(%arg0: i32) -> (i32, i32, i32, i32) {
    %c0_i32 = arith.constant 0 : i32
    %c0_i32_0 = arith.constant 0 : i32
    %c0_i32_1 = arith.constant 0 : i32
    %c0_i32_2 = arith.constant 0 : i32
    %c0_i32_3 = arith.constant 0 : i32
    return %c0_i32, %c0_i32_0, %c0_i32_1, %c0_i32_2 : i32, i32, i32, i32
  }
  func.func @transform_7(%arg0: i32) -> (i32, i32, i32, i32) {
    %c0_i32 = arith.constant 0 : i32
    %c0_i32_0 = arith.constant 0 : i32
    %c0_i32_1 = arith.constant 0 : i32
    %c0_i32_2 = arith.constant 0 : i32
    %c0_i32_3 = arith.constant 0 : i32
    return %c0_i32, %c0_i32_0, %c0_i32_1, %c0_i32_2 : i32, i32, i32, i32
  }
  func.func @transform_8(%arg0: i32) -> (i32, i32, i32, i32) {
    %c0_i32 = arith.constant 0 : i32
    %c0_i32_0 = arith.constant 0 : i32
    %c0_i32_1 = arith.constant 0 : i32
    %c0_i32_2 = arith.constant 0 : i32
    %c0_i32_3 = arith.constant 0 : i32
    return %c0_i32, %c0_i32_0, %c0_i32_1, %c0_i32_2 : i32, i32, i32, i32
  }
  func.func @transform_9(%arg0: i32) -> (i32, i32, i32) {
    %c0_i32 = arith.constant 0 : i32
    %c0_i32_0 = arith.constant 0 : i32
    %c0_i32_1 = arith.constant 0 : i32
    %c0_i32_2 = arith.constant 0 : i32
    return %c0_i32, %c0_i32_0, %c0_i32_1 : i32, i32, i32
  }
  func.func @transform_10(%arg0: i32) -> (i32, i32, i32) {
    %c0_i32 = arith.constant 0 : i32
    %c0_i32_0 = arith.constant 0 : i32
    %c0_i32_1 = arith.constant 0 : i32
    %c0_i32_2 = arith.constant 0 : i32
    return %c0_i32, %c0_i32_0, %c0_i32_1 : i32, i32, i32
  }
  func.func @transform_11(%arg0: i32) -> (i32, i32, i32) {
    %c0_i32 = arith.constant 0 : i32
    %c0_i32_0 = arith.constant 0 : i32
    %c0_i32_1 = arith.constant 0 : i32
    %c0_i32_2 = arith.constant 0 : i32
    return %c0_i32, %c0_i32_0, %c0_i32_1 : i32, i32, i32
  }
  func.func @transform_12(%arg0: i32) -> (i32, i32, i32) {
    %c0_i32 = arith.constant 0 : i32
    %c0_i32_0 = arith.constant 0 : i32
    %c0_i32_1 = arith.constant 0 : i32
    %c0_i32_2 = arith.constant 0 : i32
    return %c0_i32, %c0_i32_0, %c0_i32_1 : i32, i32, i32
  }
  func.func @transform_13(%arg0: i32) -> (i32, i32, i32) {
    %c0_i32 = arith.constant 0 : i32
    %c0_i32_0 = arith.constant 0 : i32
    %c0_i32_1 = arith.constant 0 : i32
    %c0_i32_2 = arith.constant 0 : i32
    return %c0_i32, %c0_i32_0, %c0_i32_1 : i32, i32, i32
  }
  func.func @transform_14(%arg0: i32) -> (i32, i32, i32) {
    %c0_i32 = arith.constant 0 : i32
    %c0_i32_0 = arith.constant 0 : i32
    %c0_i32_1 = arith.constant 0 : i32
    %c0_i32_2 = arith.constant 0 : i32
    return %c0_i32, %c0_i32_0, %c0_i32_1 : i32, i32, i32
  }
  func.func @transform_15(%arg0: i32) -> (i32, i32, i32) {
    %c0_i32 = arith.constant 0 : i32
    %c0_i32_0 = arith.constant 0 : i32
    %c0_i32_1 = arith.constant 0 : i32
    %c0_i32_2 = arith.constant 0 : i32
    return %c0_i32, %c0_i32_0, %c0_i32_1 : i32, i32, i32
  }
  func.func @transform_16(%arg0: i32) -> (i32, i32, i32) {
    %c0_i32 = arith.constant 0 : i32
    %c0_i32_0 = arith.constant 0 : i32
    %c0_i32_1 = arith.constant 0 : i32
    %c0_i32_2 = arith.constant 0 : i32
    return %c0_i32, %c0_i32_0, %c0_i32_1 : i32, i32, i32
  }
  func.func @transform_17(%arg0: i32) -> (i32, i32, i32) {
    %c0_i32 = arith.constant 0 : i32
    %c0_i32_0 = arith.constant 0 : i32
    %c0_i32_1 = arith.constant 0 : i32
    %c0_i32_2 = arith.constant 0 : i32
    return %c0_i32, %c0_i32_0, %c0_i32_1 : i32, i32, i32
  }
  func.func @transform_18(%arg0: i32) -> (i32, i32) {
    %c0_i32 = arith.constant 0 : i32
    %c0_i32_0 = arith.constant 0 : i32
    %c0_i32_1 = arith.constant 0 : i32
    return %c0_i32, %c0_i32_0 : i32, i32
  }
  func.func @transform_19(%arg0: i32) -> (i32, i32) {
    %c0_i32 = arith.constant 0 : i32
    %c0_i32_0 = arith.constant 0 : i32
    %c0_i32_1 = arith.constant 0 : i32
    return %c0_i32, %c0_i32_0 : i32, i32
  }
  func.func @transform_20(%arg0: i32) -> (i32, i32, i32) {
    %c0_i32 = arith.constant 0 : i32
    %c0_i32_0 = arith.constant 0 : i32
    %c0_i32_1 = arith.constant 0 : i32
    return %arg0, %c0_i32, %c0_i32_0 : i32, i32, i32
  }
}

</mosaic_0001>

<bundles_post_ra>
// kernel: tpu_custom_call.1
= control target key start
LH: loop header
LB: loop body
LE: loop exit
PB: predicated region body
PF: predicated region fallthrough
CT: control target
= control target key end

     0   :  { %s2642_s0 = inlined_call_operand.vmem [shape: f32[2,8,32], index: 0, kind: input, shape index: {}]   ;;  %s2643_s1 = inlined_call_operand.vmem [shape: f32[8,32], index: 1, kind: input, shape index: {}]   ;;  %s2644_s2 = inlined_call_operand.vmem [shape: f32[2,2,32,16], index: 2, kind: input, shape index: {}]   ;;  %s2645_s3 = inlined_call_operand.vmem [shape: f32[2,2,1,16], index: 3, kind: input, shape index: {}]   ;;  %s2646_s4 = inlined_call_operand.vmem [shape: f32[2,2,32,16], index: 4, kind: input, shape index: {}]   ;;  %s2647_s5 = inlined_call_operand.vmem [shape: f32[2,2,1,16], index: 5, kind: input, shape index: {}]   ;;  %s2648_s6 = inlined_call_operand.vmem [shape: f32[2,2,32,16], index: 6, kind: input, shape index: {}]   ;;  %s2649_s7 = inlined_call_operand.vmem [shape: f32[2,2,1,16], index: 7, kind: input, shape index: {}]   ;;  %s2650_s8 = inlined_call_operand.vmem [shape: f32[2,2,16,32], index: 8, kind: input, shape index: {}]   ;;  %s2651_s9 = inlined_call_operand.vmem [shape: f32[2,1,32], index: 9, kind: input, shape index: {}]   ;;  %s2652_s10 = inlined_call_operand.vmem [shape: f32[2,1,32], index: 10, kind: input, shape index: {}]   ;;  %s2653_s11 = inlined_call_operand.vmem [shape: f32[2,1,32], index: 11, kind: input, shape index: {}]   ;;  %s2654_s12 = inlined_call_operand.vmem [shape: f32[2,32,64], index: 12, kind: input, shape index: {}]   ;;  %s2655_s13 = inlined_call_operand.vmem [shape: f32[2,1,64], index: 13, kind: input, shape index: {}]   ;;  %s2656_s14 = inlined_call_operand.vmem [shape: f32[2,64,32], index: 14, kind: input, shape index: {}]   ;;  %s2657_s15 = inlined_call_operand.vmem [shape: f32[2,1,32], index: 15, kind: input, shape index: {}]   ;;  %s2658_s16 = inlined_call_operand.vmem [shape: f32[2,1,32], index: 16, kind: input, shape index: {}]   ;;  %s2659_s17 = inlined_call_operand.vmem [shape: f32[2,1,32], index: 17, kind: input, shape index: {}]   ;;  %s2660_s18 = inlined_call_operand.vmem [shape: f32[32,16], index: 18, kind: input, shape index: {}]   ;;  %s2661_s19 = inlined_call_operand.vmem [shape: f32[1,16], index: 19, kind: input, shape index: {}]   ;;  %s2662_s20 = inlined_call_operand.hbm [shape: f32[2,8,16], index: 20, kind: output, shape index: {}]  }
   0x1   :  { %2675 = sst [smem:[#allocation12_spill]] %s2642_s0 }
   0x2   :  { %2676 = sst [smem:[#allocation13_spill]] %s2643_s1 }
   0x3   :  { %2677 = sst [smem:[#allocation14_spill]] %s2644_s2 }
   0x4   :  { %2678 = sst [smem:[#allocation15_spill]] %s2645_s3 }
   0x5   :  { %2679 = sst [smem:[#allocation16_spill]] %s2646_s4 }
   0x6   :  { %2680 = sst [smem:[#allocation17_spill]] %s2647_s5 }
   0x7   :  { %2681 = sst [smem:[#allocation18_spill]] %s2648_s6 }
   0x8   :  { %2682 = sst [smem:[#allocation19_spill]] %s2649_s7 }
   0x9   :  { %2683 = sst [smem:[#allocation20_spill]] %s2650_s8 }
   0xa   :  { %2684 = sst [smem:[#allocation21_spill]] %s2661_s19 }
   0xb   :  { %2685 = sst [smem:[#allocation22_spill]] %s2662_s20 }
   0xc   :  { %25 = vsyncpa [#allocation3], 0 }
   0xd   :  { %27 = vsyncpa [#allocation3 + $0x1], 0  ;;  %s2125_s1 = smov 0   ;;  %s2127_s22 = smov 0  }
   0xe   :  { %s2129_s23 = smov 0   ;;  %s2131_s24 = smov 0  }
   0xf LB: > { %2686 = sst [smem:[#allocation5_spill]] %s2005_s1  ;;  %s2146_s2 = sadd.s32 4294967295, %s2017_s24   ;;  %s2017_s24 = sphi %s2131_s24, %s2711_s24   ;;  %s2013_s23 = sphi %s2129_s23, %s2713_s23   ;;  %s2009_s22 = sphi %s2127_s22, %s2715_s22   ;;  %s2005_s1 = sphi %s2125_s1, %s2714_s1  }
  0x10   : > { %2687 = sst [smem:[#allocation6_spill]] %s2013_s23  ;;  %s1749_s25 = sadd.s32 4294967294, %s2017_s24  }
  0x11   : > { %2688 = sst [smem:[#allocation7_spill]] %s2017_s24  ;;  %s2150_s3 = sadd.s32 1, %s2017_s24  }
  0x12   : > { %2689 = sst [smem:[#allocation8_spill]] %s2150_s3  ;;  %s465_s26 = sadd.s32 1, %s2013_s23 }
  0x13   : > { %s462_s27 = ssub.s32 %s2017_s24, %s2150_s3  ;;  %p475_p0 = scmp.ne.s32.totalorder %s2013_s23, %s2009_s22 }
  0x14   : > { %p463_p1 = scmp.eq.s32.totalorder %s462_s27, 0  ;;  %p476_p2 = scmp.eq.s32.totalorder %s2146_s2, 1 }
  0x15   : > { %p481_p3 = scmp.ne.s32.totalorder %s2009_s22, %s2005_s1  ;;  %p482_p4 = scmp.eq.s32.totalorder %s1749_s25, 1 }
  0x16   : > { %s2161_s28 = scalar_select %p463_p1, %s2013_s23, %s465_s26  }
  0x17   : > { %p2163_p5 = por %p476_p2, %p475_p0  ;;  %p2167_p6 = por %p482_p4, %p481_p3 }
  0x18   : > { %2690 = sst [smem:[#allocation9_spill]] %s2161_s28  ;;  %p1752_p7 = scmp.ge.s32.totalorder %s2017_s24, 1 }
  0x19   : > { %s2691_s4 = scalar_select %p2163_p5, 1, 0 }
  0x1a   : > { %s2693_s29 = scalar_select %p2167_p6, 1, 0 }
  0x1b   : > { %2692 = sst [smem:[#allocation10_spill]] %s2691_s4  ;;  %p564_p8 = scmp.lt.s32.totalorder %s2017_s24, 3 }
  0x1c   : > { %2694 = sst [smem:[#allocation11_spill]] %s2693_s29 }
  0x1d   : > { %p565_p9 = pnand %p1752_p7, %p564_p8 }
  0x1e   : > { %s2695_s21 = sld [smem:[#allocation16_spill]] (!%p565_p9)  ;;  %p621_p10 = scmp.lt.s32.totalorder (!%p565_p9), %s2146_s2, 1 }
  0x1f   : > { %568 = sbr.rel (%p565_p9) target bundleno = 4131 (0x1023), region = 100  ;;  %s2696_s27 = sld [smem:[#allocation14_spill]] (!%p565_p9) }
  0x20   : > { %s2697_s1 = sld [smem:[#allocation13_spill]] (!%p565_p9)  ;;  %s618_s4 = sand.u32 (!%p565_p9), 1, %s2009_s22  }
  0x21   : > { %s2698_s0 = sld [smem:[#allocation12_spill]] (!%p565_p9)  ;;  %s1753_s25 = sshll.u32 (!%p565_p9), %s618_s4, 3 }
  0x22   : > { %s2699_s5 = sld [smem:[#allocation17_spill]] (!%p565_p9)  ;;  %s1859_s26 = sshll.u32 (!%p565_p9), %s2146_s2, 3 }
  0x23   : > { %s2702_s6 = sld [smem:[#allocation18_spill]] (!%p565_p9)  ;;  %s1675_s19 = scalar_lea.sflag (!%p565_p9), [#allocation3], %s618_s4 }
  0x24   : > { %v669_v0 = vld [vmem:[%s2695_s21 + $0x18] sm:$0xff]  ;;  %v668_v2 = vld [vmem:[%s2695_s21 + $0x10] sm:$0xff]  ;;  %v667_v4 = vld [vmem:[%s2695_s21 + $0x8] sm:$0xff]  ;;  %s622_s23 = scalar_select %p621_p10, %s2146_s2, 1  ;;  %vm641_vm0 = vcmask 261120   ;;  %vm722_vm1 = vcmask 130048   ;;  %v628_v21 = vlaneseq }
  0x25   : > { %v636_v1 = vld [vmem:[%s2696_s27 + $0x18] sm:$0xff]  ;;  %686 = vmatpush.msra.mxu1 %v669_v0  ;;  %v635_v3 = vld [vmem:[%s2696_s27 + $0x10] sm:$0xff]  ;;  %v634_v5 = vld [vmem:[%s2696_s27 + $0x8] sm:$0xff]  ;;  %vm750_vm3 = vcmask 64512   ;;  %s2703_s7 = sld [smem:[#allocation19_spill]]  ;;  %vm1078_vm8 = vcmask 523264  }
  0x26   : > { %657 = vmatpush.msra.mxu0 %v636_v1  ;;  %v666_v6 = vld [vmem:[%s2695_s21] sm:$0xff]  ;;  %s1754_s3 = sshll.u32 %s622_s23, 3  ;;  %s2700_s23 = sld [smem:[#allocation15_spill]]  ;;  %v2228_v22 = vshrl.u32 %v628_v21, 7  ;;  %v2230_v23 = vand.u32 127, %v628_v21  ;;  %v1770_v28 = vld [vmem:[%s2695_s21 + $0x38] sm:$0xff] }
  0x27   : > { %687 = vmatpush.msra.mxu1 %v668_v2  ;;  %v633_v7 = vld [vmem:[%s2696_s27] sm:$0xff]  ;;  %s624_s20 = scalar_lea.vmem %s2698_s0, %s1754_s3  ;;  %v1764_v29 = vld [vmem:[%s2696_s27 + $0x38] sm:$0xff]  ;;  %v1769_v30 = vld [vmem:[%s2695_s21 + $0x30] sm:$0xff]  ;;  %s2704_s8 = sld [smem:[#allocation20_spill]] }
  0x28   : > { %658 = vmatpush.msra.mxu0 %v635_v3  ;;  %v626_v8 = vld [vmem:[%s2697_s1] sm:$0xff]  ;;  %vm632_vm2 = vcmp.le.s32.totalorder %v2230_v23, %v2228_v22  ;;  %v1763_v31 = vld [vmem:[%s2696_s27 + $0x30] sm:$0xff]  ;;  %v1768_v32 = vld [vmem:[%s2695_s21 + $0x28] sm:$0xff]  ;;  %s2705_s3 = sld [smem:[#allocation22_spill]] }
  0x29   : > { %688 = vmatpush.msra.mxu1 %v667_v4  ;;  %v625_v9 = vld [vmem:[%s624_s20] sm:$0xff]  ;;  %v697_v18 = vld [vmem:[%s2702_s6 + $0x18] sm:$0xff]  ;;  %v696_v19 = vld [vmem:[%s2702_s6 + $0x10] sm:$0xff] }
  0x2a   : > { %659 = vmatpush.msra.mxu0 %v634_v5  ;;  %v2205_v10 = vadd.f32 %v626_v8, %v625_v9  ;;  %v1902_v11 = vld [vmem:[%s2699_s5] ss:$0 sm:$0xff]  ;;  %714 = vmatpush.msra.mxu2 %v697_v18  ;;  %v695_v20 = vld [vmem:[%s2702_s6 + $0x8] sm:$0xff]  ;;  %v1905_v44 = vld [vmem:[%s2699_s5 + $0x1] ss:$0 sm:$0xff] }
  0x2b   : > { %689 = vmatpush.msra.mxu1 %v666_v6  ;;  %v694_v27 = vld [vmem:[%s2702_s6] sm:$0xff]  ;;  %v1762_v33 = vld [vmem:[%s2696_s27 + $0x28] sm:$0xff]  ;;  %v1776_v47 = vld [vmem:[%s2702_s6 + $0x38] sm:$0xff] }
  0x2c   : > { %660 = vmatpush.msra.mxu0 %v633_v7  ;;  %1756 = vmatmul.msk.f32.vlgmr.msra.gmra.mxu1 %vm641_vm0, %v2205_v10  ;;  %s2701_s28 = smov %s2700_s23  ;;  %v1903_v12 = vld [vmem:[%s2700_s23] ss:$0 sm:$0xff]  ;;  %v1775_v48 = vld [vmem:[%s2702_s6 + $0x30] sm:$0xff]  ;;  %v1774_v49 = vld [vmem:[%s2702_s6 + $0x28] sm:$0xff] }
  0x2d   : > { %1755 = vmatmul.msk.f32.vlgmr.msra.gmra.mxu0 %vm641_vm0, %v2205_v10  ;;  %715 = vmatpush.msra.mxu2 %v696_v19  ;;  %v1767_v34 = vld [vmem:[%s2695_s21 + $0x20] sm:$0xff]  ;;  %v786_v51 = vld [vmem:[%s2704_s8 + $0x8] sm:$0xff]  ;;  %v1783_v8 = vld [vmem:[%s2704_s8 + $0x18] sm:$0xff] }
  0x2e   : > { %809 = vmatpush.msrb.mxu0 %v1764_v29  ;;  %v1761_v35 = vld [vmem:[%s2696_s27 + $0x20] sm:$0xff]  ;;  %s1685_s1 = scalar_lea.hbm %s2705_s3, %s1859_s26 }
  0x2f   : > { %716 = vmatpush.msra.mxu2 %v695_v20  ;;  %v1904_v41 = vld [vmem:[%s2703_s7] ss:$0 sm:$0xff]  ;;  %v1906_v53 = vld [vmem:[%s2701_s28 + $0x1] ss:$0 sm:$0xff]  ;;  %s1689_s0 = sshll.u32 %s1685_s1, 4  ;;  %s1690_s0 = int_to_ptr.hbm [resolvable:$true] %s1689_s0 }
  0x30   : > { %810 = vmatpush.msrb.mxu0 %v1763_v31  ;;  %v1773_v50 = vld [vmem:[%s2702_s6 + $0x20] sm:$0xff]  ;;  %s1969_s2 = sshra.s32 %s1690_s0, 4  ;;  %s1970_s2 = int_to_ptr.hbm [resolvable:$true] %s1969_s2 }
  0x31   : > { %717 = vmatpush.msra.mxu2 %v694_v27  ;;  %v785_v59 = vld [vmem:[%s2704_s8] sm:$0xff]  ;;  %p1976_p0 = scmp.lt.s32.totalorder %s1970_s2, %s2705_s3 }
  0x32   : > { %1757 = vmatmul.msk.f32.vlgmr.msra.gmra.mxu2 %vm641_vm0, %v2205_v10  ;;  %811 = vmatpush.msrb.mxu0 %v1762_v33  ;;  %v1907_v60 = vld [vmem:[%s2703_s7 + $0x1] ss:$0 sm:$0xff] }
  0x33   : > { %870 = vmatpush.msrb.mxu2 %v1776_v47  ;;  %v1069_v47 = vld [vmem:[%s2656_s14 + $0x18] sm:$0xff] }
  0x34   : > { %812 = vmatpush.msrb.mxu0 %v1761_v35 }
  0x35   : > { %1766 = vmatmul.msk.f32.vlgmr.msrb.gmra.mxu0 %vm641_vm0, %v2205_v10  ;;  %871 = vmatpush.msrb.mxu2 %v1775_v48 }
  0x37   : > { %872 = vmatpush.msrb.mxu2 %v1774_v49 }
  0x39   : > { %873 = vmatpush.msrb.mxu2 %v1773_v50 }
  0x3a   : > { %1778 = vmatmul.msk.f32.vlgmr.msrb.gmra.mxu2 %vm641_vm0, %v2205_v10 }
  0x3b   : > { %982 = vmatpush.msra.mxu2 %v786_v51 }
  0x3d   : > { %983 = vmatpush.msra.mxu2 %v785_v59 }
  0xa9   : > { %v691_v13 = vpop.f32.mrf.mxu1 }
  0xaa   : > { %v662_v14 = vpop.f32.mrf.mxu0  ;;  %v692_v15 = vadd.f32 %v1902_v11, %v691_v13  ;;  %v1782_v13 = vld [vmem:[%s2704_s8 + $0x10] sm:$0xff] }
  0xab   : > { %v663_v16 = vadd.f32 %v1903_v12, %v662_v14 }
  0xac   : > { %1758 = vmatpush.xpose.msk.msrb.mxu1 %vm722_vm1, %v692_v15  ;;  %v1908_v15 = vld [vmem:[%s2651_s9] ss:$0 sm:$0xff] }
  0xad   : > { %v665_v17 = vmul.f32 0.25, %v663_v16 }
  0xaf   : > { %1759 = vmatmul.msk.f32.vlgmr.msrb.gmra.mxu1 %vm722_vm1, %v665_v17 }
  0xb0   : > { %840 = vmatpush.msra.mxu1 %v1770_v28 }
  0xb2   : > { %841 = vmatpush.msra.mxu1 %v1769_v30  ;;  %v814_v55 = vpop.f32.mrf.mxu0 }
  0xb3   : > { %v815_v57 = vadd.f32 %v1906_v53, %v814_v55 }
  0xb4   : > { %842 = vmatpush.msra.mxu1 %v1768_v32 }
  0xb5   : > { %v719_v42 = vpop.f32.mrf.mxu2  ;;  %v817_v58 = vmul.f32 0.25, %v815_v57  ;;  %v1910_v57 = vld [vmem:[%s2653_s11] ss:$0 sm:$0xff] }
  0xb6   : > { %843 = vmatpush.msra.mxu1 %v1767_v34  ;;  %v720_v43 = vadd.f32 %v1904_v41, %v719_v42  ;;  %v1072_v41 = vld [vmem:[%s2656_s14 + $0x30] sm:$0xff]  ;;  %v1071_v42 = vld [vmem:[%s2656_s14 + $0x28] sm:$0xff] }
  0xb7   : > { %1772 = vmatmul.msk.f32.vlgmr.msra.gmra.mxu1 %vm641_vm0, %v2205_v10 }
  0xb8   : > { %780 = vmatpush.msra.mxu3 %v720_v43  ;;  %959 = vmatpush.msrb.mxu1 %v1783_v8 }
  0xba   : > { %960 = vmatpush.msrb.mxu1 %v1782_v13 }
  0xbd   : > { %v875_v61 = vpop.f32.mrf.mxu2 }
  0xbe   : > { %v876_v62 = vadd.f32 %v1907_v60, %v875_v61  ;;  %v1068_v60 = vld [vmem:[%s2656_s14 + $0x10] sm:$0xff]  ;;  %v1067_v61 = vld [vmem:[%s2656_s14 + $0x8] sm:$0xff] }
  0xc0   : > { %934 = vmatpush.msra.mxu0 %v876_v62  ;;  %v1066_v62 = vld [vmem:[%s2656_s14] sm:$0xff] }
 0x12c   : > { %v746_v24 = vpop.f32.mrf.mxu1 }
 0x12d   : > { %v749_v25 = vsel %vm632_vm2, %v746_v24, -inf }
 0x12e   : > { %v751_v26 = vsel %vm750_vm3, %v749_v25, -inf }
 0x12f   : > { %752 = vmax.xlane.f32.xlu0 %v751_v26 }
 0x134   : > { %v845_v45 = vpop.f32.mrf.mxu1 }
 0x135   : > { %v846_v46 = vadd.f32 %v1905_v44, %v845_v45  ;;  %v1070_v45 = vld [vmem:[%s2656_s14 + $0x20] sm:$0xff] }
 0x137   : > { %1779 = vmatpush.xpose.msk.msrb.mxu3 %vm722_vm1, %v846_v46 }
 0x1a2   : > { %v753_v36 = vpop.xlane.xlu0 %752 }
 0x1a3   : > { %v754_v37 = vsub.f32 %v749_v25, %v753_v36  ;;  %v2019_v25 = vmov 32.0   ;;  %v1037_v36 = vld [vmem:[%s2654_s12 + $0x18] sm:$0xff] }
 0x1a5   : > { %v755_v38 = vmul.f32 1.442695, %v754_v37  ;;  %v1036_v37 = vld [vmem:[%s2654_s12 + $0x10] sm:$0xff] }
 0x1a7   : > { %1929 = vpow2.f32 %v755_v38  ;;  %v1035_v38 = vld [vmem:[%s2654_s12 + $0x8] sm:$0xff] }
 0x1ad   : > { %v1930_v39 = vpop.eup %1929 }
 0x1ae   : > { %v757_v40 = vsel %vm750_vm3, %v1930_v39, 0.0 }
 0x1af   : > { %758 = vadd.xlane.f32.xlu0 %v757_v40  ;;  %v1073_v40 = vld [vmem:[%s2656_s14 + $0x38] sm:$0xff] }
 0x1b0   : > { %1090 = vmatpush.msrb.mxu0 %v1073_v40 }
 0x1b2   : > { %1091 = vmatpush.msrb.mxu0 %v1072_v41 }
 0x1b4   : > { %1092 = vmatpush.msrb.mxu0 %v1071_v42 }
 0x1b6   : > { %1093 = vmatpush.msrb.mxu0 %v1070_v45  ;;  %v1913_v45 = vld [vmem:[%s2658_s16] ss:$0 sm:$0xff] }
 0x1b8   : > { %1094 = vmatpush.msrb.mxu0 %v1069_v47  ;;  %v1914_v47 = vld [vmem:[%s2659_s17] ss:$0 sm:$0xff] }
 0x1ba   : > { %1095 = vmatpush.msrb.mxu0 %v1068_v60 }
 0x1bc   : > { %1096 = vmatpush.msrb.mxu0 %v1067_v61  ;;  %v1826_v61 = vld [vmem:[%s2702_s6 + $0x78] sm:$0xff] }
 0x1be   : > { %1097 = vmatpush.msrb.mxu0 %v1066_v62 }
 0x222   : > { %v759_v52 = vpop.xlane.xlu0 %758 }
 0x223   : > { %1931 = vrcp.f32 %v759_v52 }
 0x229   : > { %v1932_v54 = vpop.eup %1931 }
 0x22a   : > { %v761_v56 = vmul.f32 %v1932_v54, %v1930_v39  ;;  %v1034_v39 = vld [vmem:[%s2654_s12] sm:$0xff] }
 0x22b   : > { %v1909_v54 = vld [vmem:[%s2652_s10] ss:$0 sm:$0xff] }
 0x22c   : > { %1760 = vmatmul.msk.f32.vlgmr.msra.gmra.mxu3 %vm750_vm3, %v761_v56 }
 0x22d   : > { %1057 = vmatpush.msra.mxu3 %v1037_v36 }
 0x22f   : > { %1058 = vmatpush.msra.mxu3 %v1036_v37  ;;  %v1811_v37 = vld [vmem:[%s2696_s27 + $0x60] sm:$0xff] }
 0x231   : > { %1059 = vmatpush.msra.mxu3 %v1035_v38 }
 0x233   : > { %1060 = vmatpush.msra.mxu3 %v1034_v39 }
 0x234   : > { %1780 = vmatmul.msk.f32.vlgmr.msrb.gmra.mxu3 %vm722_vm1, %v817_v58 }
 0x2af   : > { %v782_v63 = vpop.f32.mrf.mxu3 }
 0x2b0   : > { %1785 = vmatmul.msk.f32.vlgmr.msra.gmra.mxu2 %vm722_vm1, %v782_v63  ;;  %v1911_v63 = vld [vmem:[%s2655_s13] ss:$0 sm:$0xff] }
 0x2b7   : > { %v901_v0 = vpop.f32.mrf.mxu3 }
 0x2b8   : > { %v904_v1 = vsel %vm632_vm2, %v901_v0, -inf }
 0x2b9   : > { %v905_v2 = vsel %vm750_vm3, %v904_v1, -inf }
 0x2ba   : > { %906 = vmax.xlane.f32.xlu1 %v905_v2 }
 0x32d   : > { %v907_v3 = vpop.xlane.xlu1 %906 }
 0x32e   : > { %v908_v4 = vsub.f32 %v904_v1, %v907_v3  ;;  %v1912_v3 = vld [vmem:[%s2657_s15] ss:$0 sm:$0xff] }
 0x330   : > { %v909_v5 = vmul.f32 1.442695, %v908_v4 }
 0x332   : > { %1933 = vpow2.f32 %v909_v5 }
 0x333   : > { %v985_v16 = vpop.f32.mrf.mxu2 }
 0x338   : > { %v1934_v6 = vpop.eup %1933 }
 0x339   : > { %v911_v7 = vsel %vm750_vm3, %v1934_v6, 0.0 }
 0x33a   : > { %912 = vadd.xlane.f32.xlu1 %v911_v7 }
 0x3ad   : > { %v913_v9 = vpop.xlane.xlu1 %912 }
 0x3ae   : > { %1935 = vrcp.f32 %v913_v9 }
 0x3af   : > { %1937 = vrcp.f32 %v2019_v25  ;;  %v1795_v25 = vld [vmem:[%s2695_s21 + $0x48] sm:$0xff] }
 0x3b4   : > { %v1936_v11 = vpop.eup %1935 }
 0x3b5   : > { %v915_v12 = vmul.f32 %v1936_v11, %v1934_v6  ;;  %v1938_v26 = vpop.eup %1937 }
 0x3b6   : > { %v999_v27 = vmul.f32 32.0, %v1938_v26  ;;  %vm1003_vm4 = vweird.f32 %v1938_v26 }
 0x3b7   : > { %1781 = vmatmul.msk.f32.vlgmr.msra.gmra.mxu0 %vm750_vm3, %v915_v12 }
 0x3b8   : > { %v1000_v28 = vsub.f32 1.0, %v999_v27  ;;  %v1818_v27 = vld [vmem:[%s2695_s21 + $0x68] sm:$0xff] }
 0x3ba   : > { %v1001_v29 = vmul.f32 %v1938_v26, %v1000_v28  ;;  %v1788_v28 = vld [vmem:[%s2696_s27 + $0x40] sm:$0xff] }
 0x3bc   : > { %v1002_v30 = vadd.f32 %v1938_v26, %v1001_v29  ;;  %v1794_v29 = vld [vmem:[%s2695_s21 + $0x40] sm:$0xff] }
 0x3be   : > { %v2326_v31 = vsel %vm1003_vm4, %v1938_v26, %v1002_v30  ;;  %v1801_v26 = vld [vmem:[%s2702_s6 + $0x48] sm:$0xff]  ;;  %v1800_v30 = vld [vmem:[%s2702_s6 + $0x40] sm:$0xff] }
 0x434   : > { %v936_v14 = vpop.f32.mrf.mxu0 }
 0x435   : > { %1784 = vmatmul.msk.f32.vlgmr.msrb.gmra.mxu1 %vm722_vm1, %v936_v14  ;;  %v1791_v14 = vld [vmem:[%s2696_s27 + $0x58] sm:$0xff] }
 0x436   : > { %1160 = vmatpush.msra.mxu1 %v1791_v14 }
 0x4b2   : > { %v962_v17 = vpop.f32.mrf.mxu1 }
 0x4b3   : > { %v986_v18 = vadd.f32 %v985_v16, %v962_v17  ;;  %v1803_v16 = vld [vmem:[%s2702_s6 + $0x58] sm:$0xff] }
 0x4b4   : > { %v1820_v17 = vld [vmem:[%s2695_s21 + $0x78] sm:$0xff]  ;;  %1221 = vmatpush.msrb.mxu3 %v1803_v16  ;;  %v1810_v16 = vld [vmem:[%s2704_s8 + $0x28] sm:$0xff] }
 0x4b5   : > { %v992_v19 = vadd.f32 %v1908_v15, %v986_v18  ;;  %v1797_v15 = vld [vmem:[%s2695_s21 + $0x58] sm:$0xff]  ;;  %1346 = vmatpush.msra.mxu0 %v1820_v17  ;;  %v1790_v18 = vld [vmem:[%s2696_s27 + $0x50] sm:$0xff] }
 0x4b6   : > { %1191 = vmatpush.msrb.mxu2 %v1797_v15  ;;  %1161 = vmatpush.msra.mxu1 %v1790_v18 }
 0x4b7   : > { %v993_v20 = vmul.f32 0.5, %v992_v19  ;;  %v1796_v19 = vld [vmem:[%s2695_s21 + $0x50] sm:$0xff] }
 0x4b8   : > { %1192 = vmatpush.msrb.mxu2 %v1796_v19  ;;  %v1919_v19 = vld [vmem:[%s2701_s28 + $0x3] ss:$0 sm:$0xff] }
 0x4b9   : > { %v994_v21 = vadd.f32 %v993_v20, %v2205_v10  ;;  %v1802_v20 = vld [vmem:[%s2702_s6 + $0x50] sm:$0xff] }
 0x4ba   : > { %1222 = vmatpush.msrb.mxu3 %v1802_v20  ;;  %1193 = vmatpush.msrb.mxu2 %v1795_v25 }
 0x4bb   : > { %v995_v24 = vsel %vm641_vm0, %v994_v21, 0.0 }
 0x4bc   : > { %996 = vadd.xlane.f32.xlu2 %v995_v24  ;;  %v1789_v24 = vld [vmem:[%s2696_s27 + $0x48] sm:$0xff]  ;;  %1223 = vmatpush.msrb.mxu3 %v1801_v26  ;;  %v1809_v26 = vld [vmem:[%s2704_s8 + $0x20] sm:$0xff] }
 0x4bd   : > { %1162 = vmatpush.msra.mxu1 %v1789_v24  ;;  %1194 = vmatpush.msrb.mxu2 %v1794_v29 }
 0x4be   : > { %1224 = vmatpush.msrb.mxu3 %v1800_v30 }
 0x4bf   : > { %1163 = vmatpush.msra.mxu1 %v1788_v28 }
 0x52f   : > { %v997_v32 = vpop.xlane.xlu2 %996 }
 0x530   : > { %v1005_v33 = vmul.f32 %v2326_v31, %v997_v32  ;;  %v1817_v32 = vld [vmem:[%s2695_s21 + $0x60] sm:$0xff] }
 0x532   : > { %v1006_v34 = vsub.f32 %v994_v21, %v1005_v33  ;;  %v1819_v21 = vld [vmem:[%s2695_s21 + $0x70] sm:$0xff]  ;;  %v1814_v33 = vld [vmem:[%s2696_s27 + $0x78] sm:$0xff] }
 0x533   : > { %1347 = vmatpush.msra.mxu0 %v1819_v21 }
 0x534   : > { %v1007_v35 = vmul.f32 %v1006_v34, %v1006_v34 }
 0x535   : > { %1348 = vmatpush.msra.mxu0 %v1818_v27 }
 0x536   : > { %v1008_v10 = vsel %vm641_vm0, %v1007_v35, 0.0 }
 0x537   : > { %1009 = vadd.xlane.f32.xlu2 %v1008_v10  ;;  %1349 = vmatpush.msra.mxu0 %v1817_v32  ;;  %v1812_v10 = vld [vmem:[%s2696_s27 + $0x68] sm:$0xff] }
 0x5aa   : > { %v1010_v43 = vpop.xlane.xlu2 %1009 }
 0x5ab   : > { %v1011_v44 = vmul.f32 %v1010_v43, %v2326_v31 }
 0x5ad   : > { %v1012_v46 = vadd.f32 1e-05, %v1011_v44 }
 0x5af   : > { %1939 = vrsqrt.f32 %v1012_v46  ;;  %vm1019_vm6 = vweird.f32 %v1012_v46 }
 0x5b5   : > { %v1940_v48 = vpop.eup %1939 }
 0x5b6   : > { %v1014_v49 = vmul.f32 %v1940_v48, %v1012_v46  ;;  %vm1020_vm5 = vweird.f32 %v1940_v48 }
 0x5b7   : > { %vm1021_vm7 = vmor %vm1019_vm6, %vm1020_vm5 }
 0x5b8   : > { %v1015_v50 = vmul.f32 %v1940_v48, %v1014_v49 }
 0x5ba   : > { %v1016_v51 = vmul.f32 0.5, %v1015_v50 }
 0x5bc   : > { %v1017_v52 = vsub.f32 1.5, %v1016_v51  ;;  %v1915_v51 = vld [vmem:[%s2701_s28 + $0x2] ss:$0 sm:$0xff] }
 0x5be   : > { %v1018_v53 = vmul.f32 %v1940_v48, %v1017_v52 }
 0x5c0   : > { %v1022_v55 = vsel %vm1021_vm7, %v1940_v48, %v1018_v53  ;;  %v1917_v53 = vld [vmem:[%s2699_s5 + $0x2] ss:$0 sm:$0xff] }
 0x5c1   : > { %v1023_v56 = vmul.f32 %v1022_v55, %v1006_v34  ;;  %v1813_v34 = vld [vmem:[%s2696_s27 + $0x70] sm:$0xff]  ;;  %v1916_v55 = vld [vmem:[%s2699_s5 + $0x3] ss:$0 sm:$0xff]  ;;  %s2707_s5 = sld [smem:[#allocation21_spill]] }
 0x5c3   : > { %v1028_v58 = vmul.f32 %v1909_v54, %v1023_v56  ;;  %v1918_v54 = vld [vmem:[%s2703_s7 + $0x2] ss:$0 sm:$0xff] }
 0x5c5   : > { %v1033_v59 = vadd.f32 %v1910_v57, %v1028_v58 }
 0x5c7   : > { %1786 = vmatmul.msk.f32.vlgmr.msra.gmra.mxu3 %vm641_vm0, %v1033_v59 }
 0x5c8   : > { %1315 = vmatpush.msra.mxu3 %v1814_v33 }
 0x5ca   : > { %1316 = vmatpush.msra.mxu3 %v1813_v34 }
 0x5cc   : > { %1317 = vmatpush.msra.mxu3 %v1812_v10 }
 0x5ce   : > { %1318 = vmatpush.msra.mxu3 %v1811_v37 }
 0x64a   : > { %v1062_v0 = vpop.f32.mrf.mxu3 }
 0x64b   : > { %v1063_v1 = vadd.f32 %v1911_v63, %v1062_v0 }
 0x64d   : > { %v1065_v2 = vmax.f32 %v1063_v1, 0.0  ;;  %v1825_v1 = vld [vmem:[%s2702_s6 + $0x70] sm:$0xff] }
 0x64f   : > { %1787 = vmatmul.msk.f32.vlgmr.msrb.gmra.mxu0 %vm1078_vm8, %v1065_v2  ;;  %v1824_v2 = vld [vmem:[%s2702_s6 + $0x68] sm:$0xff] }
 0x6cc   : > { %v1099_v4 = vpop.f32.mrf.mxu0 }
 0x6cd   : > { %v1100_v5 = vadd.f32 %v1912_v3, %v1099_v4  ;;  %v1823_v3 = vld [vmem:[%s2702_s6 + $0x60] sm:$0xff]  ;;  %s620_s6 = scalar_lea.vmem [#allocation2], %s1753_s25 }
 0x6cf   : > { %v1102_v6 = vadd.f32 %v1100_v5, %v1033_v59 }
 0x6d1   : > { %v1103_v7 = vsel %vm641_vm0, %v1102_v6, 0.0 }
 0x6d2   : > { %1104 = vadd.xlane.f32.xlu0 %v1103_v7  ;;  %v1920_v7 = vld [vmem:[%s2703_s7 + $0x3] ss:$0 sm:$0xff]  ;;  %s1687_s7 = sshll.u32 %s620_s6, 4  ;;  %s1688_s7 = int_to_ptr.vmem [resolvable:$true] %s1687_s7 }
 0x745   : > { %v1105_v8 = vpop.xlane.xlu0 %1104 }
 0x746   : > { %v1106_v9 = vmul.f32 %v1105_v8, %v2326_v31 }
 0x748   : > { %v1107_v11 = vsub.f32 %v1102_v6, %v1106_v9 }
 0x74a   : > { %v1108_v12 = vmul.f32 %v1107_v11, %v1107_v11 }
 0x74c   : > { %v1109_v13 = vsel %vm641_vm0, %v1108_v12, 0.0 }
 0x74d   : > { %1110 = vadd.xlane.f32.xlu1 %v1109_v13 }
 0x7c0   : > { %v1111_v35 = vpop.xlane.xlu1 %1110 }
 0x7c1   : > { %v1112_v36 = vmul.f32 %v1111_v35, %v2326_v31 }
 0x7c3   : > { %v1113_v38 = vadd.f32 1e-05, %v1112_v36  ;;  %v1833_v36 = vld [vmem:[%s2704_s8 + $0x38] sm:$0xff] }
 0x7c4   : > { %1465 = vmatpush.msrb.mxu0 %v1833_v36  ;;  %v1642_v36 = vld [vmem:[%s2660_s18] sm:$0xff] }
 0x7c5   : > { %1941 = vrsqrt.f32 %v1113_v38  ;;  %vm1120_vm10 = vweird.f32 %v1113_v38 }
 0x7cb   : > { %v1942_v39 = vpop.eup %1941 }
 0x7cc   : > { %v1115_v40 = vmul.f32 %v1942_v39, %v1113_v38  ;;  %vm1121_vm9 = vweird.f32 %v1942_v39  ;;  %v1832_v38 = vld [vmem:[%s2704_s8 + $0x30] sm:$0xff]  ;;  %s1971_s8 = scalar_lea.hbm %s1970_s2, 8 }
 0x7cd   : > { %vm1122_vm11 = vmor %vm1120_vm10, %vm1121_vm9  ;;  %1466 = vmatpush.msrb.mxu0 %v1832_v38  ;;  %p1972_p11 = scmp.ne.s32.totalorder %s1970_s2, %s1971_s8 }
 0x7ce   : > { %v1116_v41 = vmul.f32 %v1942_v39, %v1115_v40  ;;  %v1921_v40 = vld [vmem:[%s2651_s9 + $0x1] ss:$0 sm:$0xff] }
 0x7cf   : > { %p1973_p12 = pnand %p1972_p11, %p2163_p5 }
 0x7d0   : > { %v1117_v42 = vmul.f32 0.5, %v1116_v41 }
 0x7d1   : > { %p1974_p13 = pneg %p1973_p12 }
 0x7d2   : > { %v1118_v43 = vsub.f32 1.5, %v1117_v42 }
 0x7d4   : > { %v1119_v44 = vmul.f32 %v1942_v39, %v1118_v43 }
 0x7d6   : > { %v1123_v46 = vsel %vm1122_vm11, %v1942_v39, %v1119_v44 }
 0x7d7   : > { %v1124_v48 = vmul.f32 %v1123_v46, %v1107_v11 }
 0x7d9   : > { %v1129_v49 = vmul.f32 %v1913_v45, %v1124_v48 }
 0x7db   : > { %v2451_v50 = vadd.f32 %v1914_v47, %v1129_v49 }
 0x7dd   : > { %1793 = vmatmul.msk.f32.vlgmr.msra.gmra.mxu1 %vm641_vm0, %v2451_v50  ;;  %1799 = vmatmul.msk.f32.vlgmr.msrb.gmra.mxu2 %vm641_vm0, %v2451_v50 }
 0x7de   : > { %1805 = vmatmul.msk.f32.vlgmr.msrb.gmra.mxu3 %vm641_vm0, %v2451_v50  ;;  %1822 = vmatmul.msk.f32.vlgmr.msra.gmra.mxu0 %vm641_vm0, %v2451_v50 }
 0x7e6   : > { %1816 = vmatmul.msk.f32.vlgmr.msra.gmra.mxu3 %vm641_vm0, %v2451_v50 }
 0x85a   : > { %v1165_v52 = vpop.f32.mrf.mxu1 }
 0x85b   : > { %v1166_v56 = vadd.f32 %v1915_v51, %v1165_v52  ;;  %v1351_v57 = vpop.f32.mrf.mxu0 }
 0x85c   : > { %v1352_v63 = vadd.f32 %v1916_v55, %v1351_v57  ;;  %v1840_v55 = vld [vmem:[%s2654_s12 + $0x28] sm:$0xff]  ;;  %v1852_v57 = vld [vmem:[%s2656_s14 + $0x78] sm:$0xff] }
 0x85d   : > { %v1168_v0 = vmul.f32 0.25, %v1166_v56  ;;  %v1839_v56 = vld [vmem:[%s2654_s12 + $0x20] sm:$0xff] }
 0x860   : > { %v1196_v58 = vpop.f32.mrf.mxu2 }
 0x861   : > { %v1197_v59 = vadd.f32 %v1917_v53, %v1196_v58  ;;  %v1226_v60 = vpop.f32.mrf.mxu3  ;;  %v1851_v58 = vld [vmem:[%s2656_s14 + $0x70] sm:$0xff] }
 0x862   : > { %v1227_v62 = vadd.f32 %v1918_v54, %v1226_v60  ;;  %v1842_v54 = vld [vmem:[%s2654_s12 + $0x38] sm:$0xff] }
 0x863   : > { %1806 = vmatpush.xpose.msk.msrb.mxu1 %vm722_vm1, %v1197_v59  ;;  %v1850_v59 = vld [vmem:[%s2656_s14 + $0x68] sm:$0xff] }
 0x864   : > { %1285 = vmatpush.msra.mxu2 %v1227_v62  ;;  %v1849_v62 = vld [vmem:[%s2656_s14 + $0x60] sm:$0xff] }
 0x866   : > { %1829 = vmatpush.xpose.msk.msrb.mxu2 %vm722_vm1, %v1352_v63  ;;  %1807 = vmatmul.msk.f32.vlgmr.msrb.gmra.mxu1 %vm722_vm1, %v1168_v0  ;;  %v1848_v0 = vld [vmem:[%s2656_s14 + $0x58] sm:$0xff] }
 0x867   : > { %1376 = vmatpush.msra.mxu1 %v1826_v61 }
 0x869   : > { %1377 = vmatpush.msra.mxu1 %v1825_v1  ;;  %v1320_v21 = vpop.f32.mrf.mxu3 }
 0x86a   : > { %v1321_v24 = vadd.f32 %v1919_v19, %v1320_v21  ;;  %v1925_v21 = vld [vmem:[%s2657_s15 + $0x1] ss:$0 sm:$0xff] }
 0x86b   : > { %1378 = vmatpush.msra.mxu1 %v1824_v2 }
 0x86c   : > { %v1323_v25 = vmul.f32 0.25, %v1321_v24 }
 0x86d   : > { %1379 = vmatpush.msra.mxu1 %v1823_v3 }
 0x86e   : > { %1828 = vmatmul.msk.f32.vlgmr.msra.gmra.mxu1 %vm641_vm0, %v2451_v50 }
 0x86f   : > { %1488 = vmatpush.msrb.mxu1 %v1810_v16  ;;  %v1845_v16 = vld [vmem:[%s2656_s14 + $0x40] sm:$0xff] }
 0x871   : > { %1489 = vmatpush.msrb.mxu1 %v1809_v26 }
 0x8e3   : > { %v1252_v4 = vpop.f32.mrf.mxu1 }
 0x8e4   : > { %v1255_v5 = vsel %vm632_vm2, %v1252_v4, -inf }
 0x8e5   : > { %v1256_v6 = vsel %vm750_vm3, %v1255_v5, -inf }
 0x8e6   : > { %1257 = vmax.xlane.f32.xlu2 %v1256_v6 }
 0x8eb   : > { %v1381_v8 = vpop.f32.mrf.mxu1 }
 0x8ec   : > { %v1382_v9 = vadd.f32 %v1920_v7, %v1381_v8  ;;  %v1922_v7 = vld [vmem:[%s2652_s10 + $0x1] ss:$0 sm:$0xff] }
 0x8ee   : > { %1440 = vmatpush.msrb.mxu3 %v1382_v9 }
 0x8f0   : > { %1595 = vmatpush.msra.mxu3 %v1852_v57 }
 0x8f2   : > { %1596 = vmatpush.msra.mxu3 %v1851_v58 }
 0x8f4   : > { %1597 = vmatpush.msra.mxu3 %v1850_v59 }
 0x8f6   : > { %1598 = vmatpush.msra.mxu3 %v1849_v62 }
 0x8f8   : > { %1599 = vmatpush.msra.mxu3 %v1848_v0 }
 0x959   : > { %v1258_v11 = vpop.xlane.xlu2 %1257 }
 0x95a   : > { %v1259_v12 = vsub.f32 %v1255_v5, %v1258_v11  ;;  %v1923_v11 = vld [vmem:[%s2653_s11 + $0x1] ss:$0 sm:$0xff] }
 0x95c   : > { %v1260_v13 = vmul.f32 1.442695, %v1259_v12 }
 0x95e   : > { %1943 = vpow2.f32 %v1260_v13 }
 0x964   : > { %v1944_v14 = vpop.eup %1943 }
 0x965   : > { %v1262_v15 = vsel %vm750_vm3, %v1944_v14, 0.0 }
 0x966   : > { %1263 = vadd.xlane.f32.xlu0 %v1262_v15  ;;  %v1846_v15 = vld [vmem:[%s2656_s14 + $0x48] sm:$0xff] }
 0x9d9   : > { %v1264_v17 = vpop.xlane.xlu0 %1263 }
 0x9da   : > { %1945 = vrcp.f32 %v1264_v17  ;;  %v1924_v17 = vld [vmem:[%s2655_s13 + $0x1] ss:$0 sm:$0xff] }
 0x9e0   : > { %v1946_v18 = vpop.eup %1945 }
 0x9e1   : > { %v1266_v20 = vmul.f32 %v1946_v18, %v1944_v14  ;;  %v1847_v14 = vld [vmem:[%s2656_s14 + $0x50] sm:$0xff] }
 0x9e2   : > { %1600 = vmatpush.msra.mxu3 %v1847_v14 }
 0x9e3   : > { %1808 = vmatmul.msk.f32.vlgmr.msra.gmra.mxu2 %vm750_vm3, %v1266_v20 }
 0x9e4   : > { %1561 = vmatpush.msra.mxu2 %v1842_v54  ;;  %1601 = vmatpush.msra.mxu3 %v1846_v15 }
 0x9e6   : > { %1602 = vmatpush.msra.mxu3 %v1845_v16 }
 0x9eb   : > { %1830 = vmatmul.msk.f32.vlgmr.msrb.gmra.mxu2 %vm722_vm1, %v1323_v25 }
 0xa66   : > { %v1287_v27 = vpop.f32.mrf.mxu2 }
 0xa67   : > { %1835 = vmatmul.msk.f32.vlgmr.msrb.gmra.mxu1 %vm722_vm1, %v1287_v27 }
 0xa6e   : > { %v1407_v28 = vpop.f32.mrf.mxu2 }
 0xa6f   : > { %v1410_v29 = vsel %vm632_vm2, %v1407_v28, -inf }
 0xa70   : > { %v1411_v30 = vsel %vm750_vm3, %v1410_v29, -inf }
 0xa71   : > { %1412 = vmax.xlane.f32.xlu1 %v1411_v30 }
 0xae4   : > { %v1413_v32 = vpop.xlane.xlu1 %1412  ;;  %v1491_v41 = vpop.f32.mrf.mxu1 }
 0xae5   : > { %v1414_v33 = vsub.f32 %v1410_v29, %v1413_v32 }
 0xae7   : > { %v1415_v34 = vmul.f32 1.442695, %v1414_v33 }
 0xae9   : > { %1947 = vpow2.f32 %v1415_v34  ;;  %v1645_v34 = vld [vmem:[%s2660_s18 + $0x18] sm:$0xff] }
 0xaea   : > { %1665 = vmatpush.msra.mxu0 %v1645_v34 }
 0xaef   : > { %v1948_v35 = vpop.eup %1947 }
 0xaf0   : > { %v1417_v10 = vsel %vm750_vm3, %v1948_v35, 0.0 }
 0xaf1   : > { %1418 = vadd.xlane.f32.xlu2 %v1417_v10  ;;  %v1643_v10 = vld [vmem:[%s2660_s18 + $0x8] sm:$0xff] }
 0xb64   : > { %v1419_v37 = vpop.xlane.xlu2 %1418 }
 0xb65   : > { %1949 = vrcp.f32 %v1419_v37 }
 0xb6b   : > { %v1950_v22 = vpop.eup %1949 }
 0xb6c   : > { %v1421_v23 = vmul.f32 %v1950_v22, %v1948_v35  ;;  %v1644_v35 = vld [vmem:[%s2660_s18 + $0x10] sm:$0xff] }
 0xb6d   : > { %1666 = vmatpush.msra.mxu0 %v1644_v35 }
 0xb6e   : > { %1831 = vmatmul.msk.f32.vlgmr.msrb.gmra.mxu3 %vm750_vm3, %v1421_v23 }
 0xb6f   : > { %1667 = vmatpush.msra.mxu0 %v1643_v10 }
 0xb71   : > { %1668 = vmatpush.msra.mxu0 %v1642_v36 }
 0xbf1   : > { %v1442_v39 = vpop.f32.mrf.mxu3 }
 0xbf2   : > { %1834 = vmatmul.msk.f32.vlgmr.msrb.gmra.mxu0 %vm722_vm1, %v1442_v39 }
 0xc6f   : > { %v1468_v42 = vpop.f32.mrf.mxu0 }
 0xc70   : > { %v1492_v43 = vadd.f32 %v1491_v41, %v1468_v42 }
 0xc72   : > { %v1499_v44 = vadd.f32 %v1921_v40, %v1492_v43 }
 0xc74   : > { %v1500_v45 = vmul.f32 0.5, %v1499_v44  ;;  %v1926_v44 = vld [vmem:[%s2658_s16 + $0x1] ss:$0 sm:$0xff] }
 0xc76   : > { %v1501_v46 = vadd.f32 %v1500_v45, %v2451_v50  ;;  %v1841_v50 = vld [vmem:[%s2654_s12 + $0x30] sm:$0xff] }
 0xc77   : > { %1562 = vmatpush.msra.mxu2 %v1841_v50 }
 0xc78   : > { %v1502_v47 = vsel %vm641_vm0, %v1501_v46, 0.0 }
 0xc79   : > { %1503 = vadd.xlane.f32.xlu0 %v1502_v47  ;;  %1563 = vmatpush.msra.mxu2 %v1840_v55 }
 0xc7b   : > { %1564 = vmatpush.msra.mxu2 %v1839_v56 }
 0xcec   : > { %v1504_v48 = vpop.xlane.xlu0 %1503 }
 0xced   : > { %v1505_v49 = vmul.f32 %v1504_v48, %v2326_v31 }
 0xcef   : > { %v1506_v51 = vsub.f32 %v1501_v46, %v1505_v49  ;;  %v1928_v49 = vld [vmem:[%s2707_s5] ss:$0 sm:$0xff]  ;;  %s1975_s5 = scalar_lea.hbm %s2705_s3, 16 }
 0xcf0   : > { %p1977_p1 = scmp.lt.s32.totalorder %s1975_s5, %s1971_s8 }
 0xcf1   : > { %v1507_v52 = vmul.f32 %v1506_v51, %v1506_v51 }
 0xcf2   : > { %p1978_p2 = por %p1977_p1, %p1976_p0 }
 0xcf3   : > { %v1508_v53 = vsel %vm641_vm0, %v1507_v52, 0.0 }
 0xcf4   : > { %1509 = vadd.xlane.f32.xlu1 %v1508_v53  ;;  %p1979_p3 = pnand %p1978_p2, %p1974_p13 }
 0xd67   : > { %v1510_v60 = vpop.xlane.xlu1 %1509 }
 0xd68   : > { %v1511_v61 = vmul.f32 %v1510_v60, %v2326_v31 }
 0xd6a   : > { %v1512_v63 = vadd.f32 1e-05, %v1511_v61 }
 0xd6c   : > { %1951 = vrsqrt.f32 %v1512_v63  ;;  %vm1519_vm13 = vweird.f32 %v1512_v63 }
 0xd72   : > { %v1952_v1 = vpop.eup %1951 }
 0xd73   : > { %v1514_v2 = vmul.f32 %v1952_v1, %v1512_v63  ;;  %vm1520_vm12 = vweird.f32 %v1952_v1 }
 0xd74   : > { %vm1521_vm14 = vmor %vm1519_vm13, %vm1520_vm12 }
 0xd75   : > { %v1515_v3 = vmul.f32 %v1952_v1, %v1514_v2 }
 0xd77   : > { %v1516_v4 = vmul.f32 0.5, %v1515_v3 }
 0xd79   : > { %v1517_v5 = vsub.f32 1.5, %v1516_v4 }
 0xd7b   : > { %v1518_v6 = vmul.f32 %v1952_v1, %v1517_v5 }
 0xd7d   : > { %v1522_v8 = vsel %vm1521_vm14, %v1952_v1, %v1518_v6 }
 0xd7e   : > { %v1523_v9 = vmul.f32 %v1522_v8, %v1506_v51 }
 0xd80   : > { %v1529_v12 = vmul.f32 %v1922_v7, %v1523_v9 }
 0xd82   : > { %v1535_v13 = vadd.f32 %v1923_v11, %v1529_v12 }
 0xd84   : > { %1844 = vmatmul.msk.f32.vlgmr.msra.gmra.mxu2 %vm641_vm0, %v1535_v13 }
 0xe07   : > { %v1566_v18 = vpop.f32.mrf.mxu2 }
 0xe08   : > { %v1567_v19 = vadd.f32 %v1924_v17, %v1566_v18 }
 0xe0a   : > { %v1569_v20 = vmax.f32 %v1567_v19, 0.0 }
 0xe0c   : > { %1854 = vmatmul.msk.f32.vlgmr.msra.gmra.mxu3 %vm1078_vm8, %v1569_v20 }
 0xe8f   : > { %v1604_v24 = vpop.f32.mrf.mxu3 }
 0xe90   : > { %v1605_v25 = vadd.f32 %v1925_v21, %v1604_v24 }
 0xe92   : > { %v1607_v26 = vadd.f32 %v1605_v25, %v1535_v13 }
 0xe94   : > { %v1608_v27 = vsel %vm641_vm0, %v1607_v26, 0.0 }
 0xe95   : > { %1609 = vadd.xlane.f32.xlu2 %v1608_v27 }
 0xf08   : > { %v1610_v28 = vpop.xlane.xlu2 %1609 }
 0xf09   : > { %v1611_v29 = vmul.f32 %v1610_v28, %v2326_v31 }
 0xf0b   : > { %v1612_v30 = vsub.f32 %v1607_v26, %v1611_v29 }
 0xf0d   : > { %v1613_v32 = vmul.f32 %v1612_v30, %v1612_v30 }
 0xf0f   : > { %v1614_v33 = vsel %vm641_vm0, %v1613_v32, 0.0 }
 0xf10   : > { %1615 = vadd.xlane.f32.xlu0 %v1614_v33 }
 0xf83   : > { %v1616_v37 = vpop.xlane.xlu0 %1615 }
 0xf84   : > { %v1617_v22 = vmul.f32 %v1616_v37, %v2326_v31  ;;  %v1927_v31 = vld [vmem:[%s2659_s17 + $0x1] ss:$0 sm:$0xff] }
 0xf86   : > { %v1618_v23 = vadd.f32 1e-05, %v1617_v22 }
 0xf88   : > { %1953 = vrsqrt.f32 %v1618_v23  ;;  %vm1625_vm2 = vweird.f32 %v1618_v23 }
 0xf8e   : > { %v1954_v38 = vpop.eup %1953 }
 0xf8f   : > { %v1620_v39 = vmul.f32 %v1954_v38, %v1618_v23  ;;  %vm1626_vm15 = vweird.f32 %v1954_v38 }
 0xf90   : > { %vm1627_vm3 = vmor %vm1625_vm2, %vm1626_vm15 }
 0xf91   : > { %v1621_v40 = vmul.f32 %v1954_v38, %v1620_v39 }
 0xf93   : > { %v1622_v41 = vmul.f32 0.5, %v1621_v40 }
 0xf95   : > { %v1623_v42 = vsub.f32 1.5, %v1622_v41 }
 0xf97   : > { %v1624_v43 = vmul.f32 %v1954_v38, %v1623_v42 }
 0xf99   : > { %v1628_v45 = vsel %vm1627_vm3, %v1954_v38, %v1624_v43 }
 0xf9a   : > { %v1629_v46 = vmul.f32 %v1628_v45, %v1612_v30 }
 0xf9c   : > { %v1635_v47 = vmul.f32 %v1926_v44, %v1629_v46 }
 0xf9e   : > { %v1641_v48 = vadd.f32 %v1927_v31, %v1635_v47 }
 0xfa0   : > { %1857 = vmatmul.msk.f32.vlgmr.msra.gmra.mxu0 %vm641_vm0, %v1641_v48 }
0x101d   : > { %v1670_v51 = vpop.f32.mrf.mxu0 }
0x101e   : > { %v1671_v52 = vadd.f32 %v1928_v49, %v1670_v51 }
0x1020   : > { %1673 = vst.msk [vmem:[%s620_s6] sm:$0xff] %vm722_vm1, %v1671_v52 }
0x1021   : > { %1982 = shalt.err (!%p1979_p3)
}
0x1022   : > { %1862 = dma.vmem_to_hbm [thread:$0]  (%p2163_p5), %s1688_s7, 128, %s1690_s0, %s1675_s19  }
0x1023 PF: > { %s2708_s6 = sld [smem:[#allocation7_spill]] }
0x1024   : > { %s2709_s4 = sld [smem:[#allocation5_spill]] }
0x1029   : > { %p1868_p4 = scmp.ge.s32.totalorder %s2708_s6, 2 }
0x102a   : > { %s1701_s24 = sand.u32 1, %s2709_s4  }
0x102b   : > { %p1865_p7 = pnand %p1868_p4, %p2167_p6  ;;  %s1702_s30 = scalar_lea.sflag [#allocation3], %s1701_s24 }
0x102d   : > { %p1866_p8 = pneg %p1865_p7 }
0x102f   : > { %2000 = dma.done.wait (%p1866_p8), %s1702_s30, 128  }
0x1030   : > { %2002 = vsyncadd (%p1866_p8), %s1702_s30, 4294967168  ;;  %s2711_s24 = sld [smem:[#allocation8_spill]]  ;;  %s2714_s1 = smov %s2009_s22 }
0x1031   : > { %s2712_s8 = sld [smem:[#allocation6_spill]] }
0x1032   : > { %s2713_s23 = sld [smem:[#allocation9_spill]] }
0x1036   : > { %p30_p9 = scmp.ge.s32.totalorder %s2711_s24, 4  }
0x1037   : > { %s2715_s22 = smov %s2712_s8 }
0x1038   :  { %32 = sbr.rel (!%p30_p9) target bundleno = 15 (0xf), region = 165 }
0x103d   :  { %1708 = vsyncpa [#allocation3], 1 }
0x103e   :  { %1710 = vsyncpa [#allocation3 + $0x1], 1 }

</bundles_post_ra>
